<compile_context>
chip_gen: v5e
topology: v5e:2x2
jax: 0.10.0
libtpu: 0.0.40
codegen_flags: <defaults>
</compile_context>

<pallas_src>
import functools

import jax
import jax.numpy as jnp
from jax import lax
from jax.experimental import pallas as pl
from jax.experimental.pallas import tpu as pltpu


def _row_sum_kernel(x_ref, o_ref, acc_ref, *, rows_total, tr, blocks_per_split,
                    n_row_blocks, need_mask):
    """Grid = (split, c_blocks, row_blocks); last axis is the reduction axis."""
    p = pl.program_id(0)
    r = pl.program_id(2)

    @pl.when(r == 0)
    def _init():
        acc_ref[...] = jnp.zeros_like(acc_ref)

    x = x_ref[...].astype(jnp.float32)
    acc_rows = acc_ref.shape[0]

    def _accumulate(vals):
        if acc_rows == 8:
            # Full-vreg accumulation; no per-step cross-sublane reduce.
            acc_ref[...] += vals.reshape(tr // 8, 8, vals.shape[-1]).sum(axis=0)
        else:
            acc_ref[...] += jnp.sum(vals, axis=0, keepdims=True)

    if need_mask:
        blk = p * blocks_per_split + r
        is_tail = blk == n_row_blocks - 1

        @pl.when(is_tail)
        def _tail():
            # Zero out rows past R BEFORE summing (OOB block rows are undefined).
            local = lax.broadcasted_iota(jnp.int32, x.shape, 0)
            valid = (blk * tr + local) < rows_total
            _accumulate(jnp.where(valid, x, 0.0))

        @pl.when(jnp.logical_not(is_tail))
        def _full():
            _accumulate(x)
    else:
        _accumulate(x)

    @pl.when(r == pl.num_programs(2) - 1)
    def _finalize():
        o_ref[...] = acc_ref[...].sum(axis=0, keepdims=True)


def simple_mean_negative_two_dim(x, *, tile_budget_bytes=6 * 1024 * 1024,
                                 tiny_bytes=1 << 20):
    """Pallas equivalent of torch.mean(x, dim=[-2, -3])."""
    if x.ndim != 3:
        # TODO(synk): only the module's 3-D case is lowered to Pallas.
        return jnp.mean(x, axis=(-3, -2))

    A, B, C = x.shape
    R = A * B
    itemsize = jnp.dtype(x.dtype).itemsize

    # Tiny-input fast path: kernel launch + pipeline prologue would dominate.
    if R == 0 or C == 0 or R * C * itemsize < tiny_bytes:
        return jnp.mean(x, axis=(-3, -2))

    x2 = x.reshape(R, C)                                  # free HBM reshape

    # --- lane (C) tiling: keep full C unless a minimal full-C slab is too big.
    sub = {1: 32, 2: 16}.get(itemsize, 8)                 # sublane packing
    if C % 128 == 0 and C * itemsize * sub > tile_budget_bytes:
        tc = next(t for t in (512, 256, 128) if C % t == 0)
    else:
        tc = C
    grid_c = C // tc

    # --- row tiling: ~tile_budget_bytes per input buffer, sublane-aligned.
    rows_fit = max(sub, (tile_budget_bytes // max(tc * itemsize, 1)) // sub * sub)
    rows_fit = min(rows_fit, 32768)
    if R <= rows_fit:
        tr, grid_r = R, 1                                 # full-dim block is legal
    else:
        tr, grid_r = rows_fit, pl.cdiv(R, rows_fit)
    need_mask = (R % tr) != 0

    # --- megacore (v7x): split the row-blocks across a leading "parallel" axis.
    num_splits = 2 if (grid_r >= 2 and grid_r % 2 == 0) else 1
    bps = grid_r // num_splits                            # row blocks per split

    acc_rows = 8 if tr % 8 == 0 else 1

    kernel = functools.partial(
        _row_sum_kernel, rows_total=R, tr=tr, blocks_per_split=bps,
        n_row_blocks=grid_r, need_mask=need_mask)

    partial_sums = pl.pallas_call(
        kernel,
        out_shape=jax.ShapeDtypeStruct((num_splits, C), jnp.float32),
        grid_spec=pltpu.PrefetchScalarGridSpec(
            num_scalar_prefetch=0,
            grid=(num_splits, grid_c, bps),               # reduction axis last
            in_specs=[pl.BlockSpec((tr, tc), lambda p, c, r: (p * bps + r, c))],
            out_specs=pl.BlockSpec((1, tc), lambda p, c, r: (p, c)),
            scratch_shapes=[pltpu.VMEM((acc_rows, tc), jnp.float32)],
        ),
        compiler_params=pltpu.CompilerParams(
            dimension_semantics=("parallel", "parallel", "arbitrary"),
            vmem_limit_bytes=48 * 1024 * 1024,
        ),
        cost_estimate=pl.CostEstimate(
            flops=R * C, transcendentals=0,
            bytes_accessed=R * C * itemsize + num_splits * C * 4),
    )(x2)

    # Combine the per-split f32 partial sums and scale by the true 1/(A*B).
    return (partial_sums.sum(axis=0) * (1.0 / R)).astype(x.dtype)


def _check(x, atol=1e-5, rtol=1e-5):
    z = simple_mean_negative_two_dim(x)
    jax.block_until_ready(z)
    ref = jnp.mean(x.astype(jnp.float32), axis=(-3, -2)).astype(x.dtype)
    assert z.shape == ref.shape, (z.shape, ref.shape)
    assert z.dtype == x.dtype, (z.dtype, x.dtype)
    assert jnp.allclose(z.astype(jnp.float32), ref.astype(jnp.float32),
                        atol=atol, rtol=rtol), (z, ref)
    return z


if __name__ == "__main__":
    key = jax.random.PRNGKey(0)
    k0, k1, k2, k3 = jax.random.split(key, 4)

    # 1) Module's get_example_inputs() shape (5, 5, 5): tiny fast path.
    _check(jax.random.normal(k0, (5, 5, 5), dtype=jnp.float32))

    # 2) Kernel path, single reduction step (full-C contiguous slab).
    _check(jax.random.normal(k1, (64, 48, 256), dtype=jnp.float32))

    # 3) Kernel path, multi-block: 2-way row split ("parallel" axis for v7x's
    #    two TensorCores) + in-kernel tail-row masking (no wrapper pad).
    _check(jax.random.normal(k2, (61, 100, 512), dtype=jnp.float32))

    # 4) bf16 path: 16-row sublane packing, f32 accumulation in the kernel.
    _check(jax.random.normal(k3, (32, 200, 384), dtype=jnp.bfloat16),
           atol=1e-3, rtol=1e-2)

    print("KERNEL_OK")
</pallas_src>

<mosaic_0001>
module attributes {stable_mosaic.version = 11 : i64} {
  func.func @_row_sum_kernel(%arg0: i32, %arg1: i32, %arg2: i32, %arg3: memref<3072x256xf32, #tpu.memory_space<vmem>>, %arg4: memref<1x256xf32, #tpu.memory_space<vmem>>, %arg5: memref<8x256xf32, #tpu.memory_space<vmem>>) attributes {dimension_semantics = [#tpu.dimension_semantics<parallel>, #tpu.dimension_semantics<parallel>, #tpu.dimension_semantics<arbitrary>], iteration_bounds = array<i64: 1, 1, 1>, scalar_prefetch = 0 : i64, scratch_operands = 1 : i64, tpu.core_type = #tpu.core_type<tc>, window_params = [{transform_indices = @transform_0, window_bounds = array<i64: 3072, 256>}, {transform_indices = @transform_1, window_bounds = array<i64: 1, 256>}]} {
    %c0_i32 = arith.constant 0 : i32
    %0 = arith.cmpi eq, %arg2, %c0_i32 : i32
    %1 = arith.extui %0 : i1 to i32
    %c0_i32_0 = arith.constant 0 : i32
    %2 = arith.cmpi ne, %1, %c0_i32_0 : i32
    scf.if %2 {
      %cst_8 = arith.constant 0.000000e+00 : f32
      %12 = vector.broadcast %cst_8 : f32 to vector<8x256xf32>
      %c0_9 = arith.constant 0 : index
      %c0_10 = arith.constant 0 : index
      %13 = vector.load %arg5[%c0_9, %c0_10] : memref<8x256xf32, #tpu.memory_space<vmem>>, vector<8x256xf32>
      tpu.vector_store %arg5[%c0_9, %c0_10], %12 {strides = array<i32>} : memref<8x256xf32, #tpu.memory_space<vmem>>, vector<8x256xf32>,
    } else {
    }
    %c0 = arith.constant 0 : index
    %c0_1 = arith.constant 0 : index
    %3 = vector.load %arg3[%c0, %c0_1] : memref<3072x256xf32, #tpu.memory_space<vmem>>, vector<3072x256xf32>
    %c0_2 = arith.constant 0 : index
    %c0_3 = arith.constant 0 : index
    %4 = vector.load %arg5[%c0_2, %c0_3] : memref<8x256xf32, #tpu.memory_space<vmem>>, vector<8x256xf32>
    %5 = vector.shape_cast %3 : vector<3072x256xf32> to vector<384x8x256xf32>
    %cst = arith.constant dense<0.000000e+00> : vector<8x256xf32>
    %6 = vector.multi_reduction <add>, %5, %cst [0] : vector<384x8x256xf32> to vector<8x256xf32>
    %7 = arith.addf %4, %6 : vector<8x256xf32>
    %c0_4 = arith.constant 0 : index
    %c0_5 = arith.constant 0 : index
    %8 = vector.load %arg5[%c0_4, %c0_5] : memref<8x256xf32, #tpu.memory_space<vmem>>, vector<8x256xf32>
    tpu.vector_store %arg5[%c0_4, %c0_5], %7 {strides = array<i32>} : memref<8x256xf32, #tpu.memory_space<vmem>>, vector<8x256xf32>,
    %c0_i32_6 = arith.constant 0 : i32
    %9 = arith.cmpi eq, %arg2, %c0_i32_6 : i32
    %10 = arith.extui %9 : i1 to i32
    %c0_i32_7 = arith.constant 0 : i32
    %11 = arith.cmpi ne, %10, %c0_i32_7 : i32
    scf.if %11 {
      %c0_8 = arith.constant 0 : index
      %c0_9 = arith.constant 0 : index
      %12 = vector.load %arg5[%c0_8, %c0_9] : memref<8x256xf32, #tpu.memory_space<vmem>>, vector<8x256xf32>
      %cst_10 = arith.constant dense<0.000000e+00> : vector<256xf32>
      %13 = vector.multi_reduction <add>, %12, %cst_10 [0] : vector<8x256xf32> to vector<256xf32>
      %14 = vector.shape_cast %13 : vector<256xf32> to vector<1x256xf32>
      %c0_11 = arith.constant 0 : index
      %c0_12 = arith.constant 0 : index
      %15 = vector.load %arg4[%c0_11, %c0_12] : memref<1x256xf32, #tpu.memory_space<vmem>>, vector<1x256xf32>
      tpu.vector_store %arg4[%c0_11, %c0_12], %14 {strides = array<i32>} : memref<1x256xf32, #tpu.memory_space<vmem>>, vector<1x256xf32>,
    } else {
    }
    return
  }
  func.func @transform_0(%arg0: i32, %arg1: i32, %arg2: i32) -> (i32, i32) {
    %c1_i32 = arith.constant 1 : i32
    %0 = arith.muli %arg0, %c1_i32 : i32
    %1 = arith.addi %0, %arg2 : i32
    %c0_i32 = arith.constant 0 : i32
    return %1, %arg1 : i32, i32
  }
  func.func @transform_1(%arg0: i32, %arg1: i32, %arg2: i32) -> (i32, i32) {
    %c0_i32 = arith.constant 0 : i32
    return %arg0, %arg1 : i32, i32
  }
}

</mosaic_0001>

<bundles_post_ra>
// kernel: tpu_custom_call.1
= control target key start
LH: loop header
LB: loop body
LE: loop exit
PB: predicated region body
PF: predicated region fallthrough
CT: control target
= control target key end

     0   :  { %6 = vsyncpa [#allocation4], 0  ;;  %s1699_s0 = inlined_call_operand.hbm [shape: f32[3072,256], index: 0, kind: input, shape index: {}]   ;;  %s1700_s1 = inlined_call_operand.hbm [shape: f32[1,256], index: 1, kind: output, shape index: {}]  }
   0x1   :  { %7 = vsyncpa [#allocation5], 0  ;;  %s17_s8 = sshll.u32 %s1699_s0, 4  ;;  %s1679_s9 = smov [#allocation3]   ;;  %s18_s8 = int_to_ptr.hbm [resolvable:$true] %s17_s8 }
   0x2   :  { %s19_s10 = sshll.u32 %s1679_s9, 4  ;;  %s1680_s11 = smov 256   ;;  %s20_s10 = int_to_ptr.vmem [resolvable:$true] %s19_s10 }
   0x3   :  { %s1681_s12 = smov 16  }
   0x4   :  { %25 = dma.hbm_to_vmem [thread:$0]  %s18_s8, 98304, %s20_s10, [#allocation4], %s1680_s11, %s1680_s11, %s1681_s12  }
   0x5   :  { %1675 = dma.done.wait [#allocation4], 98304  }
   0x6   :  { %1676 = vsyncadd [#allocation4], 4294868992  ;;  %v38_v0 = vld [vmem:[#allocation3] sm:$0xff]  ;;  %v39_v1 = vld [vmem:[#allocation3 + $0x8] sm:$0xff]  ;;  %s1682_s0 = smov [#allocation6]   ;;  %s1613_s16 = sshll.u32 %s1700_s1, 4  ;;  %s1614_s16 = int_to_ptr.hbm [resolvable:$true] %s1613_s16 }
   0x7   :  { %v40_v2 = vld [vmem:[#allocation3 + $0x10] sm:$0xff]  ;;  %v41_v3 = vld [vmem:[#allocation3 + $0x18] sm:$0xff]  ;;  %v42_v4 = vld [vmem:[#allocation3 + $0x20] sm:$0xff]  ;;  %s1611_s13 = sshll.u32 %s1682_s0, 4  ;;  %vm1598_vm0 = vcmask 1040384   ;;  %s1612_s13 = int_to_ptr.vmem [resolvable:$true] %s1611_s13 }
   0x8   :  { %v43_v5 = vld [vmem:[#allocation3 + $0x28] sm:$0xff]  ;;  %v808_v6 = vadd.f32 %v40_v2, %v38_v0  ;;  %v44_v7 = vld [vmem:[#allocation3 + $0x30] sm:$0xff]  ;;  %v1191_v8 = vadd.f32 %v41_v3, %v39_v1  ;;  %v45_v9 = vld [vmem:[#allocation3 + $0x38] sm:$0xff] }
   0x9   :  { %v46_v11 = vld [vmem:[#allocation3 + $0x40] sm:$0xff]  ;;  %v47_v13 = vld [vmem:[#allocation3 + $0x48] sm:$0xff]  ;;  %v48_v15 = vld [vmem:[#allocation3 + $0x50] sm:$0xff] }
   0xa   :  { %v809_v10 = vadd.f32 %v808_v6, %v42_v4  ;;  %v1192_v12 = vadd.f32 %v1191_v8, %v43_v5  ;;  %v49_v17 = vld [vmem:[#allocation3 + $0x58] sm:$0xff]  ;;  %v50_v19 = vld [vmem:[#allocation3 + $0x60] sm:$0xff]  ;;  %v51_v21 = vld [vmem:[#allocation3 + $0x68] sm:$0xff] }
   0xb   :  { %v52_v23 = vld [vmem:[#allocation3 + $0x70] sm:$0xff]  ;;  %v53_v25 = vld [vmem:[#allocation3 + $0x78] sm:$0xff]  ;;  %v54_v27 = vld [vmem:[#allocation3 + $0x80] sm:$0xff] }
   0xc   :  { %v810_v14 = vadd.f32 %v809_v10, %v44_v7  ;;  %v1193_v16 = vadd.f32 %v1192_v12, %v45_v9  ;;  %v55_v29 = vld [vmem:[#allocation3 + $0x88] sm:$0xff]  ;;  %v56_v31 = vld [vmem:[#allocation3 + $0x90] sm:$0xff]  ;;  %v57_v33 = vld [vmem:[#allocation3 + $0x98] sm:$0xff] }
   0xd   :  { %v58_v35 = vld [vmem:[#allocation3 + $0xa0] sm:$0xff]  ;;  %v59_v37 = vld [vmem:[#allocation3 + $0xa8] sm:$0xff]  ;;  %v60_v39 = vld [vmem:[#allocation3 + $0xb0] sm:$0xff] }
   0xe   :  { %v811_v18 = vadd.f32 %v810_v14, %v46_v11  ;;  %v1194_v20 = vadd.f32 %v1193_v16, %v47_v13  ;;  %v61_v41 = vld [vmem:[#allocation3 + $0xb8] sm:$0xff]  ;;  %v62_v43 = vld [vmem:[#allocation3 + $0xc0] sm:$0xff]  ;;  %v63_v45 = vld [vmem:[#allocation3 + $0xc8] sm:$0xff] }
   0xf   :  { %v64_v47 = vld [vmem:[#allocation3 + $0xd0] sm:$0xff]  ;;  %v65_v49 = vld [vmem:[#allocation3 + $0xd8] sm:$0xff]  ;;  %v66_v51 = vld [vmem:[#allocation3 + $0xe0] sm:$0xff] }
  0x10   :  { %v812_v22 = vadd.f32 %v811_v18, %v48_v15  ;;  %v1195_v24 = vadd.f32 %v1194_v20, %v49_v17  ;;  %v67_v53 = vld [vmem:[#allocation3 + $0xe8] sm:$0xff]  ;;  %v68_v55 = vld [vmem:[#allocation3 + $0xf0] sm:$0xff]  ;;  %v69_v57 = vld [vmem:[#allocation3 + $0xf8] sm:$0xff] }
  0x11   :  { %v70_v59 = vld [vmem:[#allocation3 + $0x100] sm:$0xff]  ;;  %v71_v61 = vld [vmem:[#allocation3 + $0x108] sm:$0xff]  ;;  %v72_v63 = vld [vmem:[#allocation3 + $0x110] sm:$0xff] }
  0x12   :  { %v813_v26 = vadd.f32 %v812_v22, %v50_v19  ;;  %v1196_v28 = vadd.f32 %v1195_v24, %v51_v21  ;;  %v73_v1 = vld [vmem:[#allocation3 + $0x118] sm:$0xff]  ;;  %v74_v3 = vld [vmem:[#allocation3 + $0x120] sm:$0xff]  ;;  %v75_v5 = vld [vmem:[#allocation3 + $0x128] sm:$0xff] }
  0x13   :  { %v76_v7 = vld [vmem:[#allocation3 + $0x130] sm:$0xff]  ;;  %v77_v9 = vld [vmem:[#allocation3 + $0x138] sm:$0xff]  ;;  %v78_v11 = vld [vmem:[#allocation3 + $0x140] sm:$0xff] }
  0x14   :  { %v814_v30 = vadd.f32 %v813_v26, %v52_v23  ;;  %v1197_v32 = vadd.f32 %v1196_v28, %v53_v25  ;;  %v79_v13 = vld [vmem:[#allocation3 + $0x148] sm:$0xff]  ;;  %v80_v15 = vld [vmem:[#allocation3 + $0x150] sm:$0xff]  ;;  %v81_v17 = vld [vmem:[#allocation3 + $0x158] sm:$0xff] }
  0x15   :  { %v82_v19 = vld [vmem:[#allocation3 + $0x160] sm:$0xff]  ;;  %v83_v21 = vld [vmem:[#allocation3 + $0x168] sm:$0xff]  ;;  %v84_v23 = vld [vmem:[#allocation3 + $0x170] sm:$0xff] }
  0x16   :  { %v815_v34 = vadd.f32 %v814_v30, %v54_v27  ;;  %v1198_v36 = vadd.f32 %v1197_v32, %v55_v29  ;;  %v85_v25 = vld [vmem:[#allocation3 + $0x178] sm:$0xff]  ;;  %v86_v27 = vld [vmem:[#allocation3 + $0x180] sm:$0xff]  ;;  %v87_v29 = vld [vmem:[#allocation3 + $0x188] sm:$0xff] }
  0x18   :  { %v816_v38 = vadd.f32 %v815_v34, %v56_v31  ;;  %v1199_v40 = vadd.f32 %v1198_v36, %v57_v33  ;;  %v88_v31 = vld [vmem:[#allocation3 + $0x190] sm:$0xff]  ;;  %v89_v33 = vld [vmem:[#allocation3 + $0x198] sm:$0xff] }
  0x1a   :  { %v817_v42 = vadd.f32 %v816_v38, %v58_v35  ;;  %v1200_v44 = vadd.f32 %v1199_v40, %v59_v37  ;;  %v90_v35 = vld [vmem:[#allocation3 + $0x1a0] sm:$0xff]  ;;  %v91_v37 = vld [vmem:[#allocation3 + $0x1a8] sm:$0xff] }
  0x1c   :  { %v818_v46 = vadd.f32 %v817_v42, %v60_v39  ;;  %v1201_v48 = vadd.f32 %v1200_v44, %v61_v41  ;;  %v92_v39 = vld [vmem:[#allocation3 + $0x1b0] sm:$0xff]  ;;  %v93_v41 = vld [vmem:[#allocation3 + $0x1b8] sm:$0xff] }
  0x1e   :  { %v819_v50 = vadd.f32 %v818_v46, %v62_v43  ;;  %v1202_v52 = vadd.f32 %v1201_v48, %v63_v45  ;;  %v94_v43 = vld [vmem:[#allocation3 + $0x1c0] sm:$0xff]  ;;  %v95_v45 = vld [vmem:[#allocation3 + $0x1c8] sm:$0xff] }
  0x20   :  { %v820_v54 = vadd.f32 %v819_v50, %v64_v47  ;;  %v1203_v56 = vadd.f32 %v1202_v52, %v65_v49  ;;  %v96_v47 = vld [vmem:[#allocation3 + $0x1d0] sm:$0xff]  ;;  %v97_v49 = vld [vmem:[#allocation3 + $0x1d8] sm:$0xff] }
  0x22   :  { %v821_v58 = vadd.f32 %v820_v54, %v66_v51  ;;  %v1204_v60 = vadd.f32 %v1203_v56, %v67_v53  ;;  %v98_v51 = vld [vmem:[#allocation3 + $0x1e0] sm:$0xff]  ;;  %v99_v53 = vld [vmem:[#allocation3 + $0x1e8] sm:$0xff] }
  0x24   :  { %v822_v62 = vadd.f32 %v821_v58, %v68_v55  ;;  %v1205_v0 = vadd.f32 %v1204_v60, %v69_v57  ;;  %v100_v55 = vld [vmem:[#allocation3 + $0x1f0] sm:$0xff]  ;;  %v101_v57 = vld [vmem:[#allocation3 + $0x1f8] sm:$0xff] }
  0x26   :  { %v823_v2 = vadd.f32 %v822_v62, %v70_v59  ;;  %v1206_v4 = vadd.f32 %v1205_v0, %v71_v61  ;;  %v102_v59 = vld [vmem:[#allocation3 + $0x200] sm:$0xff]  ;;  %v103_v61 = vld [vmem:[#allocation3 + $0x208] sm:$0xff] }
  0x28   :  { %v824_v6 = vadd.f32 %v823_v2, %v72_v63  ;;  %v1207_v8 = vadd.f32 %v1206_v4, %v73_v1  ;;  %v104_v63 = vld [vmem:[#allocation3 + $0x210] sm:$0xff]  ;;  %v105_v1 = vld [vmem:[#allocation3 + $0x218] sm:$0xff] }
  0x2a   :  { %v825_v10 = vadd.f32 %v824_v6, %v74_v3  ;;  %v1208_v12 = vadd.f32 %v1207_v8, %v75_v5  ;;  %v106_v3 = vld [vmem:[#allocation3 + $0x220] sm:$0xff]  ;;  %v107_v5 = vld [vmem:[#allocation3 + $0x228] sm:$0xff] }
  0x2c   :  { %v826_v14 = vadd.f32 %v825_v10, %v76_v7  ;;  %v1209_v16 = vadd.f32 %v1208_v12, %v77_v9  ;;  %v108_v7 = vld [vmem:[#allocation3 + $0x230] sm:$0xff]  ;;  %v109_v9 = vld [vmem:[#allocation3 + $0x238] sm:$0xff] }
  0x2e   :  { %v827_v18 = vadd.f32 %v826_v14, %v78_v11  ;;  %v1210_v20 = vadd.f32 %v1209_v16, %v79_v13  ;;  %v110_v11 = vld [vmem:[#allocation3 + $0x240] sm:$0xff]  ;;  %v111_v13 = vld [vmem:[#allocation3 + $0x248] sm:$0xff] }
  0x30   :  { %v828_v22 = vadd.f32 %v827_v18, %v80_v15  ;;  %v1211_v24 = vadd.f32 %v1210_v20, %v81_v17  ;;  %v112_v15 = vld [vmem:[#allocation3 + $0x250] sm:$0xff]  ;;  %v113_v17 = vld [vmem:[#allocation3 + $0x258] sm:$0xff] }
  0x32   :  { %v829_v26 = vadd.f32 %v828_v22, %v82_v19  ;;  %v1212_v28 = vadd.f32 %v1211_v24, %v83_v21  ;;  %v114_v19 = vld [vmem:[#allocation3 + $0x260] sm:$0xff]  ;;  %v115_v21 = vld [vmem:[#allocation3 + $0x268] sm:$0xff] }
  0x34   :  { %v830_v30 = vadd.f32 %v829_v26, %v84_v23  ;;  %v1213_v32 = vadd.f32 %v1212_v28, %v85_v25  ;;  %v116_v23 = vld [vmem:[#allocation3 + $0x270] sm:$0xff]  ;;  %v117_v25 = vld [vmem:[#allocation3 + $0x278] sm:$0xff] }
  0x36   :  { %v831_v34 = vadd.f32 %v830_v30, %v86_v27  ;;  %v1214_v36 = vadd.f32 %v1213_v32, %v87_v29  ;;  %v118_v27 = vld [vmem:[#allocation3 + $0x280] sm:$0xff]  ;;  %v119_v29 = vld [vmem:[#allocation3 + $0x288] sm:$0xff] }
  0x38   :  { %v832_v38 = vadd.f32 %v831_v34, %v88_v31  ;;  %v1215_v40 = vadd.f32 %v1214_v36, %v89_v33  ;;  %v120_v31 = vld [vmem:[#allocation3 + $0x290] sm:$0xff]  ;;  %v121_v33 = vld [vmem:[#allocation3 + $0x298] sm:$0xff] }
  0x3a   :  { %v833_v42 = vadd.f32 %v832_v38, %v90_v35  ;;  %v1216_v44 = vadd.f32 %v1215_v40, %v91_v37  ;;  %v122_v35 = vld [vmem:[#allocation3 + $0x2a0] sm:$0xff]  ;;  %v123_v37 = vld [vmem:[#allocation3 + $0x2a8] sm:$0xff] }
  0x3c   :  { %v834_v46 = vadd.f32 %v833_v42, %v92_v39  ;;  %v1217_v48 = vadd.f32 %v1216_v44, %v93_v41  ;;  %v124_v39 = vld [vmem:[#allocation3 + $0x2b0] sm:$0xff]  ;;  %v125_v41 = vld [vmem:[#allocation3 + $0x2b8] sm:$0xff] }
  0x3e   :  { %v835_v50 = vadd.f32 %v834_v46, %v94_v43  ;;  %v1218_v52 = vadd.f32 %v1217_v48, %v95_v45  ;;  %v126_v43 = vld [vmem:[#allocation3 + $0x2c0] sm:$0xff]  ;;  %v127_v45 = vld [vmem:[#allocation3 + $0x2c8] sm:$0xff] }
  0x40   :  { %v836_v54 = vadd.f32 %v835_v50, %v96_v47  ;;  %v1219_v56 = vadd.f32 %v1218_v52, %v97_v49  ;;  %v128_v47 = vld [vmem:[#allocation3 + $0x2d0] sm:$0xff]  ;;  %v129_v49 = vld [vmem:[#allocation3 + $0x2d8] sm:$0xff] }
  0x42   :  { %v837_v58 = vadd.f32 %v836_v54, %v98_v51  ;;  %v1220_v60 = vadd.f32 %v1219_v56, %v99_v53  ;;  %v130_v51 = vld [vmem:[#allocation3 + $0x2e0] sm:$0xff]  ;;  %v131_v53 = vld [vmem:[#allocation3 + $0x2e8] sm:$0xff] }
  0x44   :  { %v838_v62 = vadd.f32 %v837_v58, %v100_v55  ;;  %v1221_v0 = vadd.f32 %v1220_v60, %v101_v57  ;;  %v132_v55 = vld [vmem:[#allocation3 + $0x2f0] sm:$0xff]  ;;  %v133_v57 = vld [vmem:[#allocation3 + $0x2f8] sm:$0xff] }
  0x46   :  { %v839_v2 = vadd.f32 %v838_v62, %v102_v59  ;;  %v1222_v4 = vadd.f32 %v1221_v0, %v103_v61  ;;  %v134_v59 = vld [vmem:[#allocation3 + $0x300] sm:$0xff]  ;;  %v135_v61 = vld [vmem:[#allocation3 + $0x308] sm:$0xff] }
  0x48   :  { %v840_v6 = vadd.f32 %v839_v2, %v104_v63  ;;  %v1223_v8 = vadd.f32 %v1222_v4, %v105_v1  ;;  %v136_v63 = vld [vmem:[#allocation3 + $0x310] sm:$0xff]  ;;  %v137_v1 = vld [vmem:[#allocation3 + $0x318] sm:$0xff] }
  0x4a   :  { %v841_v10 = vadd.f32 %v840_v6, %v106_v3  ;;  %v1224_v12 = vadd.f32 %v1223_v8, %v107_v5  ;;  %v138_v3 = vld [vmem:[#allocation3 + $0x320] sm:$0xff]  ;;  %v139_v5 = vld [vmem:[#allocation3 + $0x328] sm:$0xff] }
  0x4c   :  { %v842_v14 = vadd.f32 %v841_v10, %v108_v7  ;;  %v1225_v16 = vadd.f32 %v1224_v12, %v109_v9  ;;  %v140_v7 = vld [vmem:[#allocation3 + $0x330] sm:$0xff]  ;;  %v141_v9 = vld [vmem:[#allocation3 + $0x338] sm:$0xff] }
  0x4e   :  { %v843_v18 = vadd.f32 %v842_v14, %v110_v11  ;;  %v1226_v20 = vadd.f32 %v1225_v16, %v111_v13  ;;  %v142_v11 = vld [vmem:[#allocation3 + $0x340] sm:$0xff]  ;;  %v143_v13 = vld [vmem:[#allocation3 + $0x348] sm:$0xff] }
  0x50   :  { %v844_v22 = vadd.f32 %v843_v18, %v112_v15  ;;  %v1227_v24 = vadd.f32 %v1226_v20, %v113_v17  ;;  %v144_v15 = vld [vmem:[#allocation3 + $0x350] sm:$0xff]  ;;  %v145_v17 = vld [vmem:[#allocation3 + $0x358] sm:$0xff] }
  0x52   :  { %v845_v26 = vadd.f32 %v844_v22, %v114_v19  ;;  %v1228_v28 = vadd.f32 %v1227_v24, %v115_v21  ;;  %v146_v19 = vld [vmem:[#allocation3 + $0x360] sm:$0xff]  ;;  %v147_v21 = vld [vmem:[#allocation3 + $0x368] sm:$0xff] }
  0x54   :  { %v846_v30 = vadd.f32 %v845_v26, %v116_v23  ;;  %v1229_v32 = vadd.f32 %v1228_v28, %v117_v25  ;;  %v148_v23 = vld [vmem:[#allocation3 + $0x370] sm:$0xff]  ;;  %v149_v25 = vld [vmem:[#allocation3 + $0x378] sm:$0xff] }
  0x56   :  { %v847_v34 = vadd.f32 %v846_v30, %v118_v27  ;;  %v1230_v36 = vadd.f32 %v1229_v32, %v119_v29  ;;  %v150_v27 = vld [vmem:[#allocation3 + $0x380] sm:$0xff]  ;;  %v151_v29 = vld [vmem:[#allocation3 + $0x388] sm:$0xff] }
  0x58   :  { %v848_v38 = vadd.f32 %v847_v34, %v120_v31  ;;  %v1231_v40 = vadd.f32 %v1230_v36, %v121_v33  ;;  %v152_v31 = vld [vmem:[#allocation3 + $0x390] sm:$0xff]  ;;  %v153_v33 = vld [vmem:[#allocation3 + $0x398] sm:$0xff] }
  0x5a   :  { %v849_v42 = vadd.f32 %v848_v38, %v122_v35  ;;  %v1232_v44 = vadd.f32 %v1231_v40, %v123_v37  ;;  %v154_v35 = vld [vmem:[#allocation3 + $0x3a0] sm:$0xff]  ;;  %v155_v37 = vld [vmem:[#allocation3 + $0x3a8] sm:$0xff] }
  0x5c   :  { %v850_v46 = vadd.f32 %v849_v42, %v124_v39  ;;  %v1233_v48 = vadd.f32 %v1232_v44, %v125_v41  ;;  %v156_v39 = vld [vmem:[#allocation3 + $0x3b0] sm:$0xff]  ;;  %v157_v41 = vld [vmem:[#allocation3 + $0x3b8] sm:$0xff] }
  0x5e   :  { %v851_v50 = vadd.f32 %v850_v46, %v126_v43  ;;  %v1234_v52 = vadd.f32 %v1233_v48, %v127_v45  ;;  %v158_v43 = vld [vmem:[#allocation3 + $0x3c0] sm:$0xff]  ;;  %v159_v45 = vld [vmem:[#allocation3 + $0x3c8] sm:$0xff] }
  0x60   :  { %v852_v54 = vadd.f32 %v851_v50, %v128_v47  ;;  %v1235_v56 = vadd.f32 %v1234_v52, %v129_v49  ;;  %v160_v47 = vld [vmem:[#allocation3 + $0x3d0] sm:$0xff]  ;;  %v161_v49 = vld [vmem:[#allocation3 + $0x3d8] sm:$0xff] }
  0x62   :  { %v853_v58 = vadd.f32 %v852_v54, %v130_v51  ;;  %v1236_v60 = vadd.f32 %v1235_v56, %v131_v53  ;;  %v162_v51 = vld [vmem:[#allocation3 + $0x3e0] sm:$0xff]  ;;  %v163_v53 = vld [vmem:[#allocation3 + $0x3e8] sm:$0xff] }
  0x64   :  { %v854_v62 = vadd.f32 %v853_v58, %v132_v55  ;;  %v1237_v0 = vadd.f32 %v1236_v60, %v133_v57  ;;  %v164_v55 = vld [vmem:[#allocation3 + $0x3f0] sm:$0xff]  ;;  %v165_v57 = vld [vmem:[#allocation3 + $0x3f8] sm:$0xff] }
  0x66   :  { %v855_v2 = vadd.f32 %v854_v62, %v134_v59  ;;  %v1238_v4 = vadd.f32 %v1237_v0, %v135_v61  ;;  %v166_v59 = vld [vmem:[#allocation3 + $0x400] sm:$0xff]  ;;  %v167_v61 = vld [vmem:[#allocation3 + $0x408] sm:$0xff] }
  0x68   :  { %v856_v6 = vadd.f32 %v855_v2, %v136_v63  ;;  %v1239_v8 = vadd.f32 %v1238_v4, %v137_v1  ;;  %v168_v63 = vld [vmem:[#allocation3 + $0x410] sm:$0xff]  ;;  %v169_v1 = vld [vmem:[#allocation3 + $0x418] sm:$0xff] }
  0x6a   :  { %v857_v10 = vadd.f32 %v856_v6, %v138_v3  ;;  %v1240_v12 = vadd.f32 %v1239_v8, %v139_v5  ;;  %v170_v3 = vld [vmem:[#allocation3 + $0x420] sm:$0xff]  ;;  %v171_v5 = vld [vmem:[#allocation3 + $0x428] sm:$0xff] }
  0x6c   :  { %v858_v14 = vadd.f32 %v857_v10, %v140_v7  ;;  %v1241_v16 = vadd.f32 %v1240_v12, %v141_v9  ;;  %v172_v7 = vld [vmem:[#allocation3 + $0x430] sm:$0xff]  ;;  %v173_v9 = vld [vmem:[#allocation3 + $0x438] sm:$0xff] }
  0x6e   :  { %v859_v18 = vadd.f32 %v858_v14, %v142_v11  ;;  %v1242_v20 = vadd.f32 %v1241_v16, %v143_v13  ;;  %v174_v11 = vld [vmem:[#allocation3 + $0x440] sm:$0xff]  ;;  %v175_v13 = vld [vmem:[#allocation3 + $0x448] sm:$0xff] }
  0x70   :  { %v860_v22 = vadd.f32 %v859_v18, %v144_v15  ;;  %v1243_v24 = vadd.f32 %v1242_v20, %v145_v17  ;;  %v176_v15 = vld [vmem:[#allocation3 + $0x450] sm:$0xff]  ;;  %v177_v17 = vld [vmem:[#allocation3 + $0x458] sm:$0xff] }
  0x72   :  { %v861_v26 = vadd.f32 %v860_v22, %v146_v19  ;;  %v1244_v28 = vadd.f32 %v1243_v24, %v147_v21  ;;  %v178_v19 = vld [vmem:[#allocation3 + $0x460] sm:$0xff]  ;;  %v179_v21 = vld [vmem:[#allocation3 + $0x468] sm:$0xff] }
  0x74   :  { %v862_v30 = vadd.f32 %v861_v26, %v148_v23  ;;  %v1245_v32 = vadd.f32 %v1244_v28, %v149_v25  ;;  %v180_v23 = vld [vmem:[#allocation3 + $0x470] sm:$0xff]  ;;  %v181_v25 = vld [vmem:[#allocation3 + $0x478] sm:$0xff] }
  0x76   :  { %v863_v34 = vadd.f32 %v862_v30, %v150_v27  ;;  %v1246_v36 = vadd.f32 %v1245_v32, %v151_v29  ;;  %v182_v27 = vld [vmem:[#allocation3 + $0x480] sm:$0xff]  ;;  %v183_v29 = vld [vmem:[#allocation3 + $0x488] sm:$0xff] }
  0x78   :  { %v864_v38 = vadd.f32 %v863_v34, %v152_v31  ;;  %v1247_v40 = vadd.f32 %v1246_v36, %v153_v33  ;;  %v184_v31 = vld [vmem:[#allocation3 + $0x490] sm:$0xff]  ;;  %v185_v33 = vld [vmem:[#allocation3 + $0x498] sm:$0xff] }
  0x7a   :  { %v865_v42 = vadd.f32 %v864_v38, %v154_v35  ;;  %v1248_v44 = vadd.f32 %v1247_v40, %v155_v37  ;;  %v186_v35 = vld [vmem:[#allocation3 + $0x4a0] sm:$0xff]  ;;  %v187_v37 = vld [vmem:[#allocation3 + $0x4a8] sm:$0xff] }
  0x7c   :  { %v866_v46 = vadd.f32 %v865_v42, %v156_v39  ;;  %v1249_v48 = vadd.f32 %v1248_v44, %v157_v41  ;;  %v188_v39 = vld [vmem:[#allocation3 + $0x4b0] sm:$0xff]  ;;  %v189_v41 = vld [vmem:[#allocation3 + $0x4b8] sm:$0xff] }
  0x7e   :  { %v867_v50 = vadd.f32 %v866_v46, %v158_v43  ;;  %v1250_v52 = vadd.f32 %v1249_v48, %v159_v45  ;;  %v190_v43 = vld [vmem:[#allocation3 + $0x4c0] sm:$0xff]  ;;  %v191_v45 = vld [vmem:[#allocation3 + $0x4c8] sm:$0xff] }
  0x80   :  { %v868_v54 = vadd.f32 %v867_v50, %v160_v47  ;;  %v1251_v56 = vadd.f32 %v1250_v52, %v161_v49  ;;  %v192_v47 = vld [vmem:[#allocation3 + $0x4d0] sm:$0xff]  ;;  %v193_v49 = vld [vmem:[#allocation3 + $0x4d8] sm:$0xff] }
  0x82   :  { %v869_v58 = vadd.f32 %v868_v54, %v162_v51  ;;  %v1252_v60 = vadd.f32 %v1251_v56, %v163_v53  ;;  %v194_v51 = vld [vmem:[#allocation3 + $0x4e0] sm:$0xff]  ;;  %v195_v53 = vld [vmem:[#allocation3 + $0x4e8] sm:$0xff] }
  0x84   :  { %v870_v62 = vadd.f32 %v869_v58, %v164_v55  ;;  %v1253_v0 = vadd.f32 %v1252_v60, %v165_v57  ;;  %v196_v55 = vld [vmem:[#allocation3 + $0x4f0] sm:$0xff]  ;;  %v197_v57 = vld [vmem:[#allocation3 + $0x4f8] sm:$0xff] }
  0x86   :  { %v871_v2 = vadd.f32 %v870_v62, %v166_v59  ;;  %v1254_v4 = vadd.f32 %v1253_v0, %v167_v61  ;;  %v198_v59 = vld [vmem:[#allocation3 + $0x500] sm:$0xff]  ;;  %v199_v61 = vld [vmem:[#allocation3 + $0x508] sm:$0xff] }
  0x88   :  { %v872_v6 = vadd.f32 %v871_v2, %v168_v63  ;;  %v1255_v8 = vadd.f32 %v1254_v4, %v169_v1  ;;  %v200_v63 = vld [vmem:[#allocation3 + $0x510] sm:$0xff]  ;;  %v201_v1 = vld [vmem:[#allocation3 + $0x518] sm:$0xff] }
  0x8a   :  { %v873_v10 = vadd.f32 %v872_v6, %v170_v3  ;;  %v1256_v12 = vadd.f32 %v1255_v8, %v171_v5  ;;  %v202_v3 = vld [vmem:[#allocation3 + $0x520] sm:$0xff]  ;;  %v203_v5 = vld [vmem:[#allocation3 + $0x528] sm:$0xff] }
  0x8c   :  { %v874_v14 = vadd.f32 %v873_v10, %v172_v7  ;;  %v1257_v16 = vadd.f32 %v1256_v12, %v173_v9  ;;  %v204_v7 = vld [vmem:[#allocation3 + $0x530] sm:$0xff]  ;;  %v205_v9 = vld [vmem:[#allocation3 + $0x538] sm:$0xff] }
  0x8e   :  { %v875_v18 = vadd.f32 %v874_v14, %v174_v11  ;;  %v1258_v20 = vadd.f32 %v1257_v16, %v175_v13  ;;  %v206_v11 = vld [vmem:[#allocation3 + $0x540] sm:$0xff]  ;;  %v207_v13 = vld [vmem:[#allocation3 + $0x548] sm:$0xff] }
  0x90   :  { %v876_v22 = vadd.f32 %v875_v18, %v176_v15  ;;  %v1259_v24 = vadd.f32 %v1258_v20, %v177_v17  ;;  %v208_v15 = vld [vmem:[#allocation3 + $0x550] sm:$0xff]  ;;  %v209_v17 = vld [vmem:[#allocation3 + $0x558] sm:$0xff] }
  0x92   :  { %v877_v26 = vadd.f32 %v876_v22, %v178_v19  ;;  %v1260_v28 = vadd.f32 %v1259_v24, %v179_v21  ;;  %v210_v19 = vld [vmem:[#allocation3 + $0x560] sm:$0xff]  ;;  %v211_v21 = vld [vmem:[#allocation3 + $0x568] sm:$0xff] }
  0x94   :  { %v878_v30 = vadd.f32 %v877_v26, %v180_v23  ;;  %v1261_v32 = vadd.f32 %v1260_v28, %v181_v25  ;;  %v212_v23 = vld [vmem:[#allocation3 + $0x570] sm:$0xff]  ;;  %v213_v25 = vld [vmem:[#allocation3 + $0x578] sm:$0xff] }
  0x96   :  { %v879_v34 = vadd.f32 %v878_v30, %v182_v27  ;;  %v1262_v36 = vadd.f32 %v1261_v32, %v183_v29  ;;  %v214_v27 = vld [vmem:[#allocation3 + $0x580] sm:$0xff]  ;;  %v215_v29 = vld [vmem:[#allocation3 + $0x588] sm:$0xff] }
  0x98   :  { %v880_v38 = vadd.f32 %v879_v34, %v184_v31  ;;  %v1263_v40 = vadd.f32 %v1262_v36, %v185_v33  ;;  %v216_v31 = vld [vmem:[#allocation3 + $0x590] sm:$0xff]  ;;  %v217_v33 = vld [vmem:[#allocation3 + $0x598] sm:$0xff] }
  0x9a   :  { %v881_v42 = vadd.f32 %v880_v38, %v186_v35  ;;  %v1264_v44 = vadd.f32 %v1263_v40, %v187_v37  ;;  %v218_v35 = vld [vmem:[#allocation3 + $0x5a0] sm:$0xff]  ;;  %v219_v37 = vld [vmem:[#allocation3 + $0x5a8] sm:$0xff] }
  0x9c   :  { %v882_v46 = vadd.f32 %v881_v42, %v188_v39  ;;  %v1265_v48 = vadd.f32 %v1264_v44, %v189_v41  ;;  %v220_v39 = vld [vmem:[#allocation3 + $0x5b0] sm:$0xff]  ;;  %v221_v41 = vld [vmem:[#allocation3 + $0x5b8] sm:$0xff] }
  0x9e   :  { %v883_v50 = vadd.f32 %v882_v46, %v190_v43  ;;  %v1266_v52 = vadd.f32 %v1265_v48, %v191_v45  ;;  %v222_v43 = vld [vmem:[#allocation3 + $0x5c0] sm:$0xff]  ;;  %v223_v45 = vld [vmem:[#allocation3 + $0x5c8] sm:$0xff] }
  0xa0   :  { %v884_v54 = vadd.f32 %v883_v50, %v192_v47  ;;  %v1267_v56 = vadd.f32 %v1266_v52, %v193_v49  ;;  %v224_v47 = vld [vmem:[#allocation3 + $0x5d0] sm:$0xff]  ;;  %v225_v49 = vld [vmem:[#allocation3 + $0x5d8] sm:$0xff] }
  0xa2   :  { %v885_v58 = vadd.f32 %v884_v54, %v194_v51  ;;  %v1268_v60 = vadd.f32 %v1267_v56, %v195_v53  ;;  %v226_v51 = vld [vmem:[#allocation3 + $0x5e0] sm:$0xff]  ;;  %v227_v53 = vld [vmem:[#allocation3 + $0x5e8] sm:$0xff] }
  0xa4   :  { %v886_v62 = vadd.f32 %v885_v58, %v196_v55  ;;  %v1269_v0 = vadd.f32 %v1268_v60, %v197_v57  ;;  %v228_v55 = vld [vmem:[#allocation3 + $0x5f0] sm:$0xff]  ;;  %v229_v57 = vld [vmem:[#allocation3 + $0x5f8] sm:$0xff] }
  0xa6   :  { %v887_v2 = vadd.f32 %v886_v62, %v198_v59  ;;  %v1270_v4 = vadd.f32 %v1269_v0, %v199_v61  ;;  %v230_v59 = vld [vmem:[#allocation3 + $0x600] sm:$0xff]  ;;  %v231_v61 = vld [vmem:[#allocation3 + $0x608] sm:$0xff] }
  0xa8   :  { %v888_v6 = vadd.f32 %v887_v2, %v200_v63  ;;  %v1271_v8 = vadd.f32 %v1270_v4, %v201_v1  ;;  %v232_v63 = vld [vmem:[#allocation3 + $0x610] sm:$0xff]  ;;  %v233_v1 = vld [vmem:[#allocation3 + $0x618] sm:$0xff] }
  0xaa   :  { %v889_v10 = vadd.f32 %v888_v6, %v202_v3  ;;  %v1272_v12 = vadd.f32 %v1271_v8, %v203_v5  ;;  %v234_v3 = vld [vmem:[#allocation3 + $0x620] sm:$0xff]  ;;  %v235_v5 = vld [vmem:[#allocation3 + $0x628] sm:$0xff] }
  0xac   :  { %v890_v14 = vadd.f32 %v889_v10, %v204_v7  ;;  %v1273_v16 = vadd.f32 %v1272_v12, %v205_v9  ;;  %v236_v7 = vld [vmem:[#allocation3 + $0x630] sm:$0xff]  ;;  %v237_v9 = vld [vmem:[#allocation3 + $0x638] sm:$0xff] }
  0xae   :  { %v891_v18 = vadd.f32 %v890_v14, %v206_v11  ;;  %v1274_v20 = vadd.f32 %v1273_v16, %v207_v13  ;;  %v238_v11 = vld [vmem:[#allocation3 + $0x640] sm:$0xff]  ;;  %v239_v13 = vld [vmem:[#allocation3 + $0x648] sm:$0xff] }
  0xb0   :  { %v892_v22 = vadd.f32 %v891_v18, %v208_v15  ;;  %v1275_v24 = vadd.f32 %v1274_v20, %v209_v17  ;;  %v240_v15 = vld [vmem:[#allocation3 + $0x650] sm:$0xff]  ;;  %v241_v17 = vld [vmem:[#allocation3 + $0x658] sm:$0xff] }
  0xb2   :  { %v893_v26 = vadd.f32 %v892_v22, %v210_v19  ;;  %v1276_v28 = vadd.f32 %v1275_v24, %v211_v21  ;;  %v242_v19 = vld [vmem:[#allocation3 + $0x660] sm:$0xff]  ;;  %v243_v21 = vld [vmem:[#allocation3 + $0x668] sm:$0xff] }
  0xb4   :  { %v894_v30 = vadd.f32 %v893_v26, %v212_v23  ;;  %v1277_v32 = vadd.f32 %v1276_v28, %v213_v25  ;;  %v244_v23 = vld [vmem:[#allocation3 + $0x670] sm:$0xff]  ;;  %v245_v25 = vld [vmem:[#allocation3 + $0x678] sm:$0xff] }
  0xb6   :  { %v895_v34 = vadd.f32 %v894_v30, %v214_v27  ;;  %v1278_v36 = vadd.f32 %v1277_v32, %v215_v29  ;;  %v246_v27 = vld [vmem:[#allocation3 + $0x680] sm:$0xff]  ;;  %v247_v29 = vld [vmem:[#allocation3 + $0x688] sm:$0xff] }
  0xb8   :  { %v896_v38 = vadd.f32 %v895_v34, %v216_v31  ;;  %v1279_v40 = vadd.f32 %v1278_v36, %v217_v33  ;;  %v248_v31 = vld [vmem:[#allocation3 + $0x690] sm:$0xff]  ;;  %v249_v33 = vld [vmem:[#allocation3 + $0x698] sm:$0xff] }
  0xba   :  { %v897_v42 = vadd.f32 %v896_v38, %v218_v35  ;;  %v1280_v44 = vadd.f32 %v1279_v40, %v219_v37  ;;  %v250_v35 = vld [vmem:[#allocation3 + $0x6a0] sm:$0xff]  ;;  %v251_v37 = vld [vmem:[#allocation3 + $0x6a8] sm:$0xff] }
  0xbc   :  { %v898_v46 = vadd.f32 %v897_v42, %v220_v39  ;;  %v1281_v48 = vadd.f32 %v1280_v44, %v221_v41  ;;  %v252_v39 = vld [vmem:[#allocation3 + $0x6b0] sm:$0xff]  ;;  %v253_v41 = vld [vmem:[#allocation3 + $0x6b8] sm:$0xff] }
  0xbe   :  { %v899_v50 = vadd.f32 %v898_v46, %v222_v43  ;;  %v1282_v52 = vadd.f32 %v1281_v48, %v223_v45  ;;  %v254_v43 = vld [vmem:[#allocation3 + $0x6c0] sm:$0xff]  ;;  %v255_v45 = vld [vmem:[#allocation3 + $0x6c8] sm:$0xff] }
  0xc0   :  { %v900_v54 = vadd.f32 %v899_v50, %v224_v47  ;;  %v1283_v56 = vadd.f32 %v1282_v52, %v225_v49  ;;  %v256_v47 = vld [vmem:[#allocation3 + $0x6d0] sm:$0xff]  ;;  %v257_v49 = vld [vmem:[#allocation3 + $0x6d8] sm:$0xff] }
  0xc2   :  { %v901_v58 = vadd.f32 %v900_v54, %v226_v51  ;;  %v1284_v60 = vadd.f32 %v1283_v56, %v227_v53  ;;  %v258_v51 = vld [vmem:[#allocation3 + $0x6e0] sm:$0xff]  ;;  %v259_v53 = vld [vmem:[#allocation3 + $0x6e8] sm:$0xff] }
  0xc4   :  { %v902_v62 = vadd.f32 %v901_v58, %v228_v55  ;;  %v1285_v0 = vadd.f32 %v1284_v60, %v229_v57  ;;  %v260_v55 = vld [vmem:[#allocation3 + $0x6f0] sm:$0xff]  ;;  %v261_v57 = vld [vmem:[#allocation3 + $0x6f8] sm:$0xff] }
  0xc6   :  { %v903_v2 = vadd.f32 %v902_v62, %v230_v59  ;;  %v1286_v4 = vadd.f32 %v1285_v0, %v231_v61  ;;  %v262_v59 = vld [vmem:[#allocation3 + $0x700] sm:$0xff]  ;;  %v263_v61 = vld [vmem:[#allocation3 + $0x708] sm:$0xff] }
  0xc8   :  { %v904_v6 = vadd.f32 %v903_v2, %v232_v63  ;;  %v1287_v8 = vadd.f32 %v1286_v4, %v233_v1  ;;  %v264_v63 = vld [vmem:[#allocation3 + $0x710] sm:$0xff]  ;;  %v265_v1 = vld [vmem:[#allocation3 + $0x718] sm:$0xff] }
  0xca   :  { %v905_v10 = vadd.f32 %v904_v6, %v234_v3  ;;  %v1288_v12 = vadd.f32 %v1287_v8, %v235_v5  ;;  %v266_v3 = vld [vmem:[#allocation3 + $0x720] sm:$0xff]  ;;  %v267_v5 = vld [vmem:[#allocation3 + $0x728] sm:$0xff] }
  0xcc   :  { %v906_v14 = vadd.f32 %v905_v10, %v236_v7  ;;  %v1289_v16 = vadd.f32 %v1288_v12, %v237_v9  ;;  %v268_v7 = vld [vmem:[#allocation3 + $0x730] sm:$0xff]  ;;  %v269_v9 = vld [vmem:[#allocation3 + $0x738] sm:$0xff] }
  0xce   :  { %v907_v18 = vadd.f32 %v906_v14, %v238_v11  ;;  %v1290_v20 = vadd.f32 %v1289_v16, %v239_v13  ;;  %v270_v11 = vld [vmem:[#allocation3 + $0x740] sm:$0xff]  ;;  %v271_v13 = vld [vmem:[#allocation3 + $0x748] sm:$0xff] }
  0xd0   :  { %v908_v22 = vadd.f32 %v907_v18, %v240_v15  ;;  %v1291_v24 = vadd.f32 %v1290_v20, %v241_v17  ;;  %v272_v15 = vld [vmem:[#allocation3 + $0x750] sm:$0xff]  ;;  %v273_v17 = vld [vmem:[#allocation3 + $0x758] sm:$0xff] }
  0xd2   :  { %v909_v26 = vadd.f32 %v908_v22, %v242_v19  ;;  %v1292_v28 = vadd.f32 %v1291_v24, %v243_v21  ;;  %v274_v19 = vld [vmem:[#allocation3 + $0x760] sm:$0xff]  ;;  %v275_v21 = vld [vmem:[#allocation3 + $0x768] sm:$0xff] }
  0xd4   :  { %v910_v30 = vadd.f32 %v909_v26, %v244_v23  ;;  %v1293_v32 = vadd.f32 %v1292_v28, %v245_v25  ;;  %v276_v23 = vld [vmem:[#allocation3 + $0x770] sm:$0xff]  ;;  %v277_v25 = vld [vmem:[#allocation3 + $0x778] sm:$0xff] }
  0xd6   :  { %v911_v34 = vadd.f32 %v910_v30, %v246_v27  ;;  %v1294_v36 = vadd.f32 %v1293_v32, %v247_v29  ;;  %v278_v27 = vld [vmem:[#allocation3 + $0x780] sm:$0xff]  ;;  %v279_v29 = vld [vmem:[#allocation3 + $0x788] sm:$0xff] }
  0xd8   :  { %v912_v38 = vadd.f32 %v911_v34, %v248_v31  ;;  %v1295_v40 = vadd.f32 %v1294_v36, %v249_v33  ;;  %v280_v31 = vld [vmem:[#allocation3 + $0x790] sm:$0xff]  ;;  %v281_v33 = vld [vmem:[#allocation3 + $0x798] sm:$0xff] }
  0xda   :  { %v913_v42 = vadd.f32 %v912_v38, %v250_v35  ;;  %v1296_v44 = vadd.f32 %v1295_v40, %v251_v37  ;;  %v282_v35 = vld [vmem:[#allocation3 + $0x7a0] sm:$0xff]  ;;  %v283_v37 = vld [vmem:[#allocation3 + $0x7a8] sm:$0xff] }
  0xdc   :  { %v914_v46 = vadd.f32 %v913_v42, %v252_v39  ;;  %v1297_v48 = vadd.f32 %v1296_v44, %v253_v41  ;;  %v284_v39 = vld [vmem:[#allocation3 + $0x7b0] sm:$0xff]  ;;  %v285_v41 = vld [vmem:[#allocation3 + $0x7b8] sm:$0xff] }
  0xde   :  { %v915_v50 = vadd.f32 %v914_v46, %v254_v43  ;;  %v1298_v52 = vadd.f32 %v1297_v48, %v255_v45  ;;  %v286_v43 = vld [vmem:[#allocation3 + $0x7c0] sm:$0xff]  ;;  %v287_v45 = vld [vmem:[#allocation3 + $0x7c8] sm:$0xff] }
  0xe0   :  { %v916_v54 = vadd.f32 %v915_v50, %v256_v47  ;;  %v1299_v56 = vadd.f32 %v1298_v52, %v257_v49  ;;  %v288_v47 = vld [vmem:[#allocation3 + $0x7d0] sm:$0xff]  ;;  %v289_v49 = vld [vmem:[#allocation3 + $0x7d8] sm:$0xff] }
  0xe2   :  { %v917_v58 = vadd.f32 %v916_v54, %v258_v51  ;;  %v1300_v60 = vadd.f32 %v1299_v56, %v259_v53  ;;  %v290_v51 = vld [vmem:[#allocation3 + $0x7e0] sm:$0xff]  ;;  %v291_v53 = vld [vmem:[#allocation3 + $0x7e8] sm:$0xff] }
  0xe4   :  { %v918_v62 = vadd.f32 %v917_v58, %v260_v55  ;;  %v1301_v0 = vadd.f32 %v1300_v60, %v261_v57  ;;  %v292_v55 = vld [vmem:[#allocation3 + $0x7f0] sm:$0xff]  ;;  %v293_v57 = vld [vmem:[#allocation3 + $0x7f8] sm:$0xff] }
  0xe6   :  { %v919_v2 = vadd.f32 %v918_v62, %v262_v59  ;;  %v1302_v4 = vadd.f32 %v1301_v0, %v263_v61  ;;  %v294_v59 = vld [vmem:[#allocation3 + $0x800] sm:$0xff]  ;;  %v295_v61 = vld [vmem:[#allocation3 + $0x808] sm:$0xff] }
  0xe8   :  { %v920_v6 = vadd.f32 %v919_v2, %v264_v63  ;;  %v1303_v8 = vadd.f32 %v1302_v4, %v265_v1  ;;  %v296_v63 = vld [vmem:[#allocation3 + $0x810] sm:$0xff]  ;;  %v297_v1 = vld [vmem:[#allocation3 + $0x818] sm:$0xff] }
  0xea   :  { %v921_v10 = vadd.f32 %v920_v6, %v266_v3  ;;  %v1304_v12 = vadd.f32 %v1303_v8, %v267_v5  ;;  %v298_v3 = vld [vmem:[#allocation3 + $0x820] sm:$0xff]  ;;  %v299_v5 = vld [vmem:[#allocation3 + $0x828] sm:$0xff] }
  0xec   :  { %v922_v14 = vadd.f32 %v921_v10, %v268_v7  ;;  %v1305_v16 = vadd.f32 %v1304_v12, %v269_v9  ;;  %v300_v7 = vld [vmem:[#allocation3 + $0x830] sm:$0xff]  ;;  %v301_v9 = vld [vmem:[#allocation3 + $0x838] sm:$0xff] }
  0xee   :  { %v923_v18 = vadd.f32 %v922_v14, %v270_v11  ;;  %v1306_v20 = vadd.f32 %v1305_v16, %v271_v13  ;;  %v302_v11 = vld [vmem:[#allocation3 + $0x840] sm:$0xff]  ;;  %v303_v13 = vld [vmem:[#allocation3 + $0x848] sm:$0xff] }
  0xf0   :  { %v924_v22 = vadd.f32 %v923_v18, %v272_v15  ;;  %v1307_v24 = vadd.f32 %v1306_v20, %v273_v17  ;;  %v304_v15 = vld [vmem:[#allocation3 + $0x850] sm:$0xff]  ;;  %v305_v17 = vld [vmem:[#allocation3 + $0x858] sm:$0xff] }
  0xf2   :  { %v925_v26 = vadd.f32 %v924_v22, %v274_v19  ;;  %v1308_v28 = vadd.f32 %v1307_v24, %v275_v21  ;;  %v306_v19 = vld [vmem:[#allocation3 + $0x860] sm:$0xff]  ;;  %v307_v21 = vld [vmem:[#allocation3 + $0x868] sm:$0xff] }
  0xf4   :  { %v926_v30 = vadd.f32 %v925_v26, %v276_v23  ;;  %v1309_v32 = vadd.f32 %v1308_v28, %v277_v25  ;;  %v308_v23 = vld [vmem:[#allocation3 + $0x870] sm:$0xff]  ;;  %v309_v25 = vld [vmem:[#allocation3 + $0x878] sm:$0xff] }
  0xf6   :  { %v927_v34 = vadd.f32 %v926_v30, %v278_v27  ;;  %v1310_v36 = vadd.f32 %v1309_v32, %v279_v29  ;;  %v310_v27 = vld [vmem:[#allocation3 + $0x880] sm:$0xff]  ;;  %v311_v29 = vld [vmem:[#allocation3 + $0x888] sm:$0xff] }
  0xf8   :  { %v928_v38 = vadd.f32 %v927_v34, %v280_v31  ;;  %v1311_v40 = vadd.f32 %v1310_v36, %v281_v33  ;;  %v312_v31 = vld [vmem:[#allocation3 + $0x890] sm:$0xff]  ;;  %v313_v33 = vld [vmem:[#allocation3 + $0x898] sm:$0xff] }
  0xfa   :  { %v929_v42 = vadd.f32 %v928_v38, %v282_v35  ;;  %v1312_v44 = vadd.f32 %v1311_v40, %v283_v37  ;;  %v314_v35 = vld [vmem:[#allocation3 + $0x8a0] sm:$0xff]  ;;  %v315_v37 = vld [vmem:[#allocation3 + $0x8a8] sm:$0xff] }
  0xfc   :  { %v930_v46 = vadd.f32 %v929_v42, %v284_v39  ;;  %v1313_v48 = vadd.f32 %v1312_v44, %v285_v41  ;;  %v316_v39 = vld [vmem:[#allocation3 + $0x8b0] sm:$0xff]  ;;  %v317_v41 = vld [vmem:[#allocation3 + $0x8b8] sm:$0xff] }
  0xfe   :  { %v931_v50 = vadd.f32 %v930_v46, %v286_v43  ;;  %v1314_v52 = vadd.f32 %v1313_v48, %v287_v45  ;;  %v318_v43 = vld [vmem:[#allocation3 + $0x8c0] sm:$0xff]  ;;  %v319_v45 = vld [vmem:[#allocation3 + $0x8c8] sm:$0xff] }
 0x100   :  { %v932_v54 = vadd.f32 %v931_v50, %v288_v47  ;;  %v1315_v56 = vadd.f32 %v1314_v52, %v289_v49  ;;  %v320_v47 = vld [vmem:[#allocation3 + $0x8d0] sm:$0xff]  ;;  %v321_v49 = vld [vmem:[#allocation3 + $0x8d8] sm:$0xff] }
 0x102   :  { %v933_v58 = vadd.f32 %v932_v54, %v290_v51  ;;  %v1316_v60 = vadd.f32 %v1315_v56, %v291_v53  ;;  %v322_v51 = vld [vmem:[#allocation3 + $0x8e0] sm:$0xff]  ;;  %v323_v53 = vld [vmem:[#allocation3 + $0x8e8] sm:$0xff] }
 0x104   :  { %v934_v62 = vadd.f32 %v933_v58, %v292_v55  ;;  %v1317_v0 = vadd.f32 %v1316_v60, %v293_v57  ;;  %v324_v55 = vld [vmem:[#allocation3 + $0x8f0] sm:$0xff]  ;;  %v325_v57 = vld [vmem:[#allocation3 + $0x8f8] sm:$0xff] }
 0x106   :  { %v935_v2 = vadd.f32 %v934_v62, %v294_v59  ;;  %v1318_v4 = vadd.f32 %v1317_v0, %v295_v61  ;;  %v326_v59 = vld [vmem:[#allocation3 + $0x900] sm:$0xff]  ;;  %v327_v61 = vld [vmem:[#allocation3 + $0x908] sm:$0xff] }
 0x108   :  { %v936_v6 = vadd.f32 %v935_v2, %v296_v63  ;;  %v1319_v8 = vadd.f32 %v1318_v4, %v297_v1  ;;  %v328_v63 = vld [vmem:[#allocation3 + $0x910] sm:$0xff]  ;;  %v329_v1 = vld [vmem:[#allocation3 + $0x918] sm:$0xff] }
 0x10a   :  { %v937_v10 = vadd.f32 %v936_v6, %v298_v3  ;;  %v1320_v12 = vadd.f32 %v1319_v8, %v299_v5  ;;  %v330_v3 = vld [vmem:[#allocation3 + $0x920] sm:$0xff]  ;;  %v331_v5 = vld [vmem:[#allocation3 + $0x928] sm:$0xff] }
 0x10c   :  { %v938_v14 = vadd.f32 %v937_v10, %v300_v7  ;;  %v1321_v16 = vadd.f32 %v1320_v12, %v301_v9  ;;  %v332_v7 = vld [vmem:[#allocation3 + $0x930] sm:$0xff]  ;;  %v333_v9 = vld [vmem:[#allocation3 + $0x938] sm:$0xff] }
 0x10e   :  { %v939_v18 = vadd.f32 %v938_v14, %v302_v11  ;;  %v1322_v20 = vadd.f32 %v1321_v16, %v303_v13  ;;  %v334_v11 = vld [vmem:[#allocation3 + $0x940] sm:$0xff]  ;;  %v335_v13 = vld [vmem:[#allocation3 + $0x948] sm:$0xff] }
 0x110   :  { %v940_v22 = vadd.f32 %v939_v18, %v304_v15  ;;  %v1323_v24 = vadd.f32 %v1322_v20, %v305_v17  ;;  %v336_v15 = vld [vmem:[#allocation3 + $0x950] sm:$0xff]  ;;  %v337_v17 = vld [vmem:[#allocation3 + $0x958] sm:$0xff] }
 0x112   :  { %v941_v26 = vadd.f32 %v940_v22, %v306_v19  ;;  %v1324_v28 = vadd.f32 %v1323_v24, %v307_v21  ;;  %v338_v19 = vld [vmem:[#allocation3 + $0x960] sm:$0xff]  ;;  %v339_v21 = vld [vmem:[#allocation3 + $0x968] sm:$0xff] }
 0x114   :  { %v942_v30 = vadd.f32 %v941_v26, %v308_v23  ;;  %v1325_v32 = vadd.f32 %v1324_v28, %v309_v25  ;;  %v340_v23 = vld [vmem:[#allocation3 + $0x970] sm:$0xff]  ;;  %v341_v25 = vld [vmem:[#allocation3 + $0x978] sm:$0xff] }
 0x116   :  { %v943_v34 = vadd.f32 %v942_v30, %v310_v27  ;;  %v1326_v36 = vadd.f32 %v1325_v32, %v311_v29  ;;  %v342_v27 = vld [vmem:[#allocation3 + $0x980] sm:$0xff]  ;;  %v343_v29 = vld [vmem:[#allocation3 + $0x988] sm:$0xff] }
 0x118   :  { %v944_v38 = vadd.f32 %v943_v34, %v312_v31  ;;  %v1327_v40 = vadd.f32 %v1326_v36, %v313_v33  ;;  %v344_v31 = vld [vmem:[#allocation3 + $0x990] sm:$0xff]  ;;  %v345_v33 = vld [vmem:[#allocation3 + $0x998] sm:$0xff] }
 0x11a   :  { %v945_v42 = vadd.f32 %v944_v38, %v314_v35  ;;  %v1328_v44 = vadd.f32 %v1327_v40, %v315_v37  ;;  %v346_v35 = vld [vmem:[#allocation3 + $0x9a0] sm:$0xff]  ;;  %v347_v37 = vld [vmem:[#allocation3 + $0x9a8] sm:$0xff] }
 0x11c   :  { %v946_v46 = vadd.f32 %v945_v42, %v316_v39  ;;  %v1329_v48 = vadd.f32 %v1328_v44, %v317_v41  ;;  %v348_v39 = vld [vmem:[#allocation3 + $0x9b0] sm:$0xff]  ;;  %v349_v41 = vld [vmem:[#allocation3 + $0x9b8] sm:$0xff] }
 0x11e   :  { %v947_v50 = vadd.f32 %v946_v46, %v318_v43  ;;  %v1330_v52 = vadd.f32 %v1329_v48, %v319_v45  ;;  %v350_v43 = vld [vmem:[#allocation3 + $0x9c0] sm:$0xff]  ;;  %v351_v45 = vld [vmem:[#allocation3 + $0x9c8] sm:$0xff] }
 0x120   :  { %v948_v54 = vadd.f32 %v947_v50, %v320_v47  ;;  %v1331_v56 = vadd.f32 %v1330_v52, %v321_v49  ;;  %v352_v47 = vld [vmem:[#allocation3 + $0x9d0] sm:$0xff]  ;;  %v353_v49 = vld [vmem:[#allocation3 + $0x9d8] sm:$0xff] }
 0x122   :  { %v949_v58 = vadd.f32 %v948_v54, %v322_v51  ;;  %v1332_v60 = vadd.f32 %v1331_v56, %v323_v53  ;;  %v354_v51 = vld [vmem:[#allocation3 + $0x9e0] sm:$0xff]  ;;  %v355_v53 = vld [vmem:[#allocation3 + $0x9e8] sm:$0xff] }
 0x124   :  { %v950_v62 = vadd.f32 %v949_v58, %v324_v55  ;;  %v1333_v0 = vadd.f32 %v1332_v60, %v325_v57  ;;  %v356_v55 = vld [vmem:[#allocation3 + $0x9f0] sm:$0xff]  ;;  %v357_v57 = vld [vmem:[#allocation3 + $0x9f8] sm:$0xff] }
 0x126   :  { %v951_v2 = vadd.f32 %v950_v62, %v326_v59  ;;  %v1334_v4 = vadd.f32 %v1333_v0, %v327_v61  ;;  %v358_v59 = vld [vmem:[#allocation3 + $0xa00] sm:$0xff]  ;;  %v359_v61 = vld [vmem:[#allocation3 + $0xa08] sm:$0xff] }
 0x128   :  { %v952_v6 = vadd.f32 %v951_v2, %v328_v63  ;;  %v1335_v8 = vadd.f32 %v1334_v4, %v329_v1  ;;  %v360_v63 = vld [vmem:[#allocation3 + $0xa10] sm:$0xff]  ;;  %v361_v1 = vld [vmem:[#allocation3 + $0xa18] sm:$0xff] }
 0x12a   :  { %v953_v10 = vadd.f32 %v952_v6, %v330_v3  ;;  %v1336_v12 = vadd.f32 %v1335_v8, %v331_v5  ;;  %v362_v3 = vld [vmem:[#allocation3 + $0xa20] sm:$0xff]  ;;  %v363_v5 = vld [vmem:[#allocation3 + $0xa28] sm:$0xff] }
 0x12c   :  { %v954_v14 = vadd.f32 %v953_v10, %v332_v7  ;;  %v1337_v16 = vadd.f32 %v1336_v12, %v333_v9  ;;  %v364_v7 = vld [vmem:[#allocation3 + $0xa30] sm:$0xff]  ;;  %v365_v9 = vld [vmem:[#allocation3 + $0xa38] sm:$0xff] }
 0x12e   :  { %v955_v18 = vadd.f32 %v954_v14, %v334_v11  ;;  %v1338_v20 = vadd.f32 %v1337_v16, %v335_v13  ;;  %v366_v11 = vld [vmem:[#allocation3 + $0xa40] sm:$0xff]  ;;  %v367_v13 = vld [vmem:[#allocation3 + $0xa48] sm:$0xff] }
 0x130   :  { %v956_v22 = vadd.f32 %v955_v18, %v336_v15  ;;  %v1339_v24 = vadd.f32 %v1338_v20, %v337_v17  ;;  %v368_v15 = vld [vmem:[#allocation3 + $0xa50] sm:$0xff]  ;;  %v369_v17 = vld [vmem:[#allocation3 + $0xa58] sm:$0xff] }
 0x132   :  { %v957_v26 = vadd.f32 %v956_v22, %v338_v19  ;;  %v1340_v28 = vadd.f32 %v1339_v24, %v339_v21  ;;  %v370_v19 = vld [vmem:[#allocation3 + $0xa60] sm:$0xff]  ;;  %v371_v21 = vld [vmem:[#allocation3 + $0xa68] sm:$0xff] }
 0x134   :  { %v958_v30 = vadd.f32 %v957_v26, %v340_v23  ;;  %v1341_v32 = vadd.f32 %v1340_v28, %v341_v25  ;;  %v372_v23 = vld [vmem:[#allocation3 + $0xa70] sm:$0xff]  ;;  %v373_v25 = vld [vmem:[#allocation3 + $0xa78] sm:$0xff] }
 0x136   :  { %v959_v34 = vadd.f32 %v958_v30, %v342_v27  ;;  %v1342_v36 = vadd.f32 %v1341_v32, %v343_v29  ;;  %v374_v27 = vld [vmem:[#allocation3 + $0xa80] sm:$0xff]  ;;  %v375_v29 = vld [vmem:[#allocation3 + $0xa88] sm:$0xff] }
 0x138   :  { %v960_v38 = vadd.f32 %v959_v34, %v344_v31  ;;  %v1343_v40 = vadd.f32 %v1342_v36, %v345_v33  ;;  %v376_v31 = vld [vmem:[#allocation3 + $0xa90] sm:$0xff]  ;;  %v377_v33 = vld [vmem:[#allocation3 + $0xa98] sm:$0xff] }
 0x13a   :  { %v961_v42 = vadd.f32 %v960_v38, %v346_v35  ;;  %v1344_v44 = vadd.f32 %v1343_v40, %v347_v37  ;;  %v378_v35 = vld [vmem:[#allocation3 + $0xaa0] sm:$0xff]  ;;  %v379_v37 = vld [vmem:[#allocation3 + $0xaa8] sm:$0xff] }
 0x13c   :  { %v962_v46 = vadd.f32 %v961_v42, %v348_v39  ;;  %v1345_v48 = vadd.f32 %v1344_v44, %v349_v41  ;;  %v380_v39 = vld [vmem:[#allocation3 + $0xab0] sm:$0xff]  ;;  %v381_v41 = vld [vmem:[#allocation3 + $0xab8] sm:$0xff] }
 0x13e   :  { %v963_v50 = vadd.f32 %v962_v46, %v350_v43  ;;  %v1346_v52 = vadd.f32 %v1345_v48, %v351_v45  ;;  %v382_v43 = vld [vmem:[#allocation3 + $0xac0] sm:$0xff]  ;;  %v383_v45 = vld [vmem:[#allocation3 + $0xac8] sm:$0xff] }
 0x140   :  { %v964_v54 = vadd.f32 %v963_v50, %v352_v47  ;;  %v1347_v56 = vadd.f32 %v1346_v52, %v353_v49  ;;  %v384_v47 = vld [vmem:[#allocation3 + $0xad0] sm:$0xff]  ;;  %v385_v49 = vld [vmem:[#allocation3 + $0xad8] sm:$0xff] }
 0x142   :  { %v965_v58 = vadd.f32 %v964_v54, %v354_v51  ;;  %v1348_v60 = vadd.f32 %v1347_v56, %v355_v53  ;;  %v386_v51 = vld [vmem:[#allocation3 + $0xae0] sm:$0xff]  ;;  %v387_v53 = vld [vmem:[#allocation3 + $0xae8] sm:$0xff] }
 0x144   :  { %v966_v62 = vadd.f32 %v965_v58, %v356_v55  ;;  %v1349_v0 = vadd.f32 %v1348_v60, %v357_v57  ;;  %v388_v55 = vld [vmem:[#allocation3 + $0xaf0] sm:$0xff]  ;;  %v389_v57 = vld [vmem:[#allocation3 + $0xaf8] sm:$0xff] }
 0x146   :  { %v967_v2 = vadd.f32 %v966_v62, %v358_v59  ;;  %v1350_v4 = vadd.f32 %v1349_v0, %v359_v61  ;;  %v390_v59 = vld [vmem:[#allocation3 + $0xb00] sm:$0xff]  ;;  %v391_v61 = vld [vmem:[#allocation3 + $0xb08] sm:$0xff] }
 0x148   :  { %v968_v6 = vadd.f32 %v967_v2, %v360_v63  ;;  %v1351_v8 = vadd.f32 %v1350_v4, %v361_v1  ;;  %v392_v63 = vld [vmem:[#allocation3 + $0xb10] sm:$0xff]  ;;  %v393_v1 = vld [vmem:[#allocation3 + $0xb18] sm:$0xff] }
 0x14a   :  { %v969_v10 = vadd.f32 %v968_v6, %v362_v3  ;;  %v1352_v12 = vadd.f32 %v1351_v8, %v363_v5  ;;  %v394_v3 = vld [vmem:[#allocation3 + $0xb20] sm:$0xff]  ;;  %v395_v5 = vld [vmem:[#allocation3 + $0xb28] sm:$0xff] }
 0x14c   :  { %v970_v14 = vadd.f32 %v969_v10, %v364_v7  ;;  %v1353_v16 = vadd.f32 %v1352_v12, %v365_v9  ;;  %v396_v7 = vld [vmem:[#allocation3 + $0xb30] sm:$0xff]  ;;  %v397_v9 = vld [vmem:[#allocation3 + $0xb38] sm:$0xff] }
 0x14e   :  { %v971_v18 = vadd.f32 %v970_v14, %v366_v11  ;;  %v1354_v20 = vadd.f32 %v1353_v16, %v367_v13  ;;  %v398_v11 = vld [vmem:[#allocation3 + $0xb40] sm:$0xff]  ;;  %v399_v13 = vld [vmem:[#allocation3 + $0xb48] sm:$0xff] }
 0x150   :  { %v972_v22 = vadd.f32 %v971_v18, %v368_v15  ;;  %v1355_v24 = vadd.f32 %v1354_v20, %v369_v17  ;;  %v400_v15 = vld [vmem:[#allocation3 + $0xb50] sm:$0xff]  ;;  %v401_v17 = vld [vmem:[#allocation3 + $0xb58] sm:$0xff] }
 0x152   :  { %v973_v26 = vadd.f32 %v972_v22, %v370_v19  ;;  %v1356_v28 = vadd.f32 %v1355_v24, %v371_v21  ;;  %v402_v19 = vld [vmem:[#allocation3 + $0xb60] sm:$0xff]  ;;  %v403_v21 = vld [vmem:[#allocation3 + $0xb68] sm:$0xff] }
 0x154   :  { %v974_v30 = vadd.f32 %v973_v26, %v372_v23  ;;  %v1357_v32 = vadd.f32 %v1356_v28, %v373_v25  ;;  %v404_v23 = vld [vmem:[#allocation3 + $0xb70] sm:$0xff]  ;;  %v405_v25 = vld [vmem:[#allocation3 + $0xb78] sm:$0xff] }
 0x156   :  { %v975_v34 = vadd.f32 %v974_v30, %v374_v27  ;;  %v1358_v36 = vadd.f32 %v1357_v32, %v375_v29  ;;  %v406_v27 = vld [vmem:[#allocation3 + $0xb80] sm:$0xff]  ;;  %v407_v29 = vld [vmem:[#allocation3 + $0xb88] sm:$0xff] }
 0x158   :  { %v976_v38 = vadd.f32 %v975_v34, %v376_v31  ;;  %v1359_v40 = vadd.f32 %v1358_v36, %v377_v33  ;;  %v408_v31 = vld [vmem:[#allocation3 + $0xb90] sm:$0xff]  ;;  %v409_v33 = vld [vmem:[#allocation3 + $0xb98] sm:$0xff] }
 0x15a   :  { %v977_v42 = vadd.f32 %v976_v38, %v378_v35  ;;  %v1360_v44 = vadd.f32 %v1359_v40, %v379_v37  ;;  %v410_v35 = vld [vmem:[#allocation3 + $0xba0] sm:$0xff]  ;;  %v411_v37 = vld [vmem:[#allocation3 + $0xba8] sm:$0xff] }
 0x15c   :  { %v978_v46 = vadd.f32 %v977_v42, %v380_v39  ;;  %v1361_v48 = vadd.f32 %v1360_v44, %v381_v41  ;;  %v412_v39 = vld [vmem:[#allocation3 + $0xbb0] sm:$0xff]  ;;  %v413_v41 = vld [vmem:[#allocation3 + $0xbb8] sm:$0xff] }
 0x15e   :  { %v979_v50 = vadd.f32 %v978_v46, %v382_v43  ;;  %v1362_v52 = vadd.f32 %v1361_v48, %v383_v45  ;;  %v414_v43 = vld [vmem:[#allocation3 + $0xbc0] sm:$0xff]  ;;  %v415_v45 = vld [vmem:[#allocation3 + $0xbc8] sm:$0xff] }
 0x160   :  { %v980_v54 = vadd.f32 %v979_v50, %v384_v47  ;;  %v1363_v56 = vadd.f32 %v1362_v52, %v385_v49  ;;  %v416_v47 = vld [vmem:[#allocation3 + $0xbd0] sm:$0xff]  ;;  %v417_v49 = vld [vmem:[#allocation3 + $0xbd8] sm:$0xff] }
 0x162   :  { %v981_v58 = vadd.f32 %v980_v54, %v386_v51  ;;  %v1364_v60 = vadd.f32 %v1363_v56, %v387_v53  ;;  %v418_v51 = vld [vmem:[#allocation3 + $0xbe0] sm:$0xff]  ;;  %v419_v53 = vld [vmem:[#allocation3 + $0xbe8] sm:$0xff] }
 0x164   :  { %v982_v62 = vadd.f32 %v981_v58, %v388_v55  ;;  %v1365_v0 = vadd.f32 %v1364_v60, %v389_v57  ;;  %v420_v55 = vld [vmem:[#allocation3 + $0xbf0] sm:$0xff]  ;;  %v421_v57 = vld [vmem:[#allocation3 + $0xbf8] sm:$0xff] }
 0x166   :  { %v983_v2 = vadd.f32 %v982_v62, %v390_v59  ;;  %v1366_v4 = vadd.f32 %v1365_v0, %v391_v61  ;;  %v422_v59 = vld [vmem:[#allocation3 + $0xc00] sm:$0xff]  ;;  %v423_v61 = vld [vmem:[#allocation3 + $0xc08] sm:$0xff] }
 0x168   :  { %v984_v6 = vadd.f32 %v983_v2, %v392_v63  ;;  %v1367_v8 = vadd.f32 %v1366_v4, %v393_v1  ;;  %v424_v63 = vld [vmem:[#allocation3 + $0xc10] sm:$0xff]  ;;  %v425_v1 = vld [vmem:[#allocation3 + $0xc18] sm:$0xff] }
 0x16a   :  { %v985_v10 = vadd.f32 %v984_v6, %v394_v3  ;;  %v1368_v12 = vadd.f32 %v1367_v8, %v395_v5  ;;  %v426_v3 = vld [vmem:[#allocation3 + $0xc20] sm:$0xff]  ;;  %v427_v5 = vld [vmem:[#allocation3 + $0xc28] sm:$0xff] }
 0x16c   :  { %v986_v14 = vadd.f32 %v985_v10, %v396_v7  ;;  %v1369_v16 = vadd.f32 %v1368_v12, %v397_v9  ;;  %v428_v7 = vld [vmem:[#allocation3 + $0xc30] sm:$0xff]  ;;  %v429_v9 = vld [vmem:[#allocation3 + $0xc38] sm:$0xff] }
 0x16e   :  { %v987_v18 = vadd.f32 %v986_v14, %v398_v11  ;;  %v1370_v20 = vadd.f32 %v1369_v16, %v399_v13  ;;  %v430_v11 = vld [vmem:[#allocation3 + $0xc40] sm:$0xff]  ;;  %v431_v13 = vld [vmem:[#allocation3 + $0xc48] sm:$0xff] }
 0x170   :  { %v988_v22 = vadd.f32 %v987_v18, %v400_v15  ;;  %v1371_v24 = vadd.f32 %v1370_v20, %v401_v17  ;;  %v432_v15 = vld [vmem:[#allocation3 + $0xc50] sm:$0xff]  ;;  %v433_v17 = vld [vmem:[#allocation3 + $0xc58] sm:$0xff] }
 0x172   :  { %v989_v26 = vadd.f32 %v988_v22, %v402_v19  ;;  %v1372_v28 = vadd.f32 %v1371_v24, %v403_v21  ;;  %v434_v19 = vld [vmem:[#allocation3 + $0xc60] sm:$0xff]  ;;  %v435_v21 = vld [vmem:[#allocation3 + $0xc68] sm:$0xff] }
 0x174   :  { %v990_v30 = vadd.f32 %v989_v26, %v404_v23  ;;  %v1373_v32 = vadd.f32 %v1372_v28, %v405_v25  ;;  %v436_v23 = vld [vmem:[#allocation3 + $0xc70] sm:$0xff]  ;;  %v437_v25 = vld [vmem:[#allocation3 + $0xc78] sm:$0xff] }
 0x176   :  { %v991_v34 = vadd.f32 %v990_v30, %v406_v27  ;;  %v1374_v36 = vadd.f32 %v1373_v32, %v407_v29  ;;  %v438_v27 = vld [vmem:[#allocation3 + $0xc80] sm:$0xff]  ;;  %v439_v29 = vld [vmem:[#allocation3 + $0xc88] sm:$0xff] }
 0x178   :  { %v992_v38 = vadd.f32 %v991_v34, %v408_v31  ;;  %v1375_v40 = vadd.f32 %v1374_v36, %v409_v33  ;;  %v440_v31 = vld [vmem:[#allocation3 + $0xc90] sm:$0xff]  ;;  %v441_v33 = vld [vmem:[#allocation3 + $0xc98] sm:$0xff] }
 0x17a   :  { %v993_v42 = vadd.f32 %v992_v38, %v410_v35  ;;  %v1376_v44 = vadd.f32 %v1375_v40, %v411_v37  ;;  %v442_v35 = vld [vmem:[#allocation3 + $0xca0] sm:$0xff]  ;;  %v443_v37 = vld [vmem:[#allocation3 + $0xca8] sm:$0xff] }
 0x17c   :  { %v994_v46 = vadd.f32 %v993_v42, %v412_v39  ;;  %v1377_v48 = vadd.f32 %v1376_v44, %v413_v41  ;;  %v444_v39 = vld [vmem:[#allocation3 + $0xcb0] sm:$0xff]  ;;  %v445_v41 = vld [vmem:[#allocation3 + $0xcb8] sm:$0xff] }
 0x17e   :  { %v995_v50 = vadd.f32 %v994_v46, %v414_v43  ;;  %v1378_v52 = vadd.f32 %v1377_v48, %v415_v45  ;;  %v446_v43 = vld [vmem:[#allocation3 + $0xcc0] sm:$0xff]  ;;  %v447_v45 = vld [vmem:[#allocation3 + $0xcc8] sm:$0xff] }
 0x180   :  { %v996_v54 = vadd.f32 %v995_v50, %v416_v47  ;;  %v1379_v56 = vadd.f32 %v1378_v52, %v417_v49  ;;  %v448_v47 = vld [vmem:[#allocation3 + $0xcd0] sm:$0xff]  ;;  %v449_v49 = vld [vmem:[#allocation3 + $0xcd8] sm:$0xff] }
 0x182   :  { %v997_v58 = vadd.f32 %v996_v54, %v418_v51  ;;  %v1380_v60 = vadd.f32 %v1379_v56, %v419_v53  ;;  %v450_v51 = vld [vmem:[#allocation3 + $0xce0] sm:$0xff]  ;;  %v451_v53 = vld [vmem:[#allocation3 + $0xce8] sm:$0xff] }
 0x184   :  { %v998_v62 = vadd.f32 %v997_v58, %v420_v55  ;;  %v1381_v0 = vadd.f32 %v1380_v60, %v421_v57  ;;  %v452_v55 = vld [vmem:[#allocation3 + $0xcf0] sm:$0xff]  ;;  %v453_v57 = vld [vmem:[#allocation3 + $0xcf8] sm:$0xff] }
 0x186   :  { %v999_v2 = vadd.f32 %v998_v62, %v422_v59  ;;  %v1382_v4 = vadd.f32 %v1381_v0, %v423_v61  ;;  %v454_v59 = vld [vmem:[#allocation3 + $0xd00] sm:$0xff]  ;;  %v455_v61 = vld [vmem:[#allocation3 + $0xd08] sm:$0xff] }
 0x188   :  { %v1000_v6 = vadd.f32 %v999_v2, %v424_v63  ;;  %v1383_v8 = vadd.f32 %v1382_v4, %v425_v1  ;;  %v456_v63 = vld [vmem:[#allocation3 + $0xd10] sm:$0xff]  ;;  %v457_v1 = vld [vmem:[#allocation3 + $0xd18] sm:$0xff] }
 0x18a   :  { %v1001_v10 = vadd.f32 %v1000_v6, %v426_v3  ;;  %v1384_v12 = vadd.f32 %v1383_v8, %v427_v5  ;;  %v458_v3 = vld [vmem:[#allocation3 + $0xd20] sm:$0xff]  ;;  %v459_v5 = vld [vmem:[#allocation3 + $0xd28] sm:$0xff] }
 0x18c   :  { %v1002_v14 = vadd.f32 %v1001_v10, %v428_v7  ;;  %v1385_v16 = vadd.f32 %v1384_v12, %v429_v9  ;;  %v460_v7 = vld [vmem:[#allocation3 + $0xd30] sm:$0xff]  ;;  %v461_v9 = vld [vmem:[#allocation3 + $0xd38] sm:$0xff] }
 0x18e   :  { %v1003_v18 = vadd.f32 %v1002_v14, %v430_v11  ;;  %v1386_v20 = vadd.f32 %v1385_v16, %v431_v13  ;;  %v462_v11 = vld [vmem:[#allocation3 + $0xd40] sm:$0xff]  ;;  %v463_v13 = vld [vmem:[#allocation3 + $0xd48] sm:$0xff] }
 0x190   :  { %v1004_v22 = vadd.f32 %v1003_v18, %v432_v15  ;;  %v1387_v24 = vadd.f32 %v1386_v20, %v433_v17  ;;  %v464_v15 = vld [vmem:[#allocation3 + $0xd50] sm:$0xff]  ;;  %v465_v17 = vld [vmem:[#allocation3 + $0xd58] sm:$0xff] }
 0x192   :  { %v1005_v26 = vadd.f32 %v1004_v22, %v434_v19  ;;  %v1388_v28 = vadd.f32 %v1387_v24, %v435_v21  ;;  %v466_v19 = vld [vmem:[#allocation3 + $0xd60] sm:$0xff]  ;;  %v467_v21 = vld [vmem:[#allocation3 + $0xd68] sm:$0xff] }
 0x194   :  { %v1006_v30 = vadd.f32 %v1005_v26, %v436_v23  ;;  %v1389_v32 = vadd.f32 %v1388_v28, %v437_v25  ;;  %v468_v23 = vld [vmem:[#allocation3 + $0xd70] sm:$0xff]  ;;  %v469_v25 = vld [vmem:[#allocation3 + $0xd78] sm:$0xff] }
 0x196   :  { %v1007_v34 = vadd.f32 %v1006_v30, %v438_v27  ;;  %v1390_v36 = vadd.f32 %v1389_v32, %v439_v29  ;;  %v470_v27 = vld [vmem:[#allocation3 + $0xd80] sm:$0xff]  ;;  %v471_v29 = vld [vmem:[#allocation3 + $0xd88] sm:$0xff] }
 0x198   :  { %v1008_v38 = vadd.f32 %v1007_v34, %v440_v31  ;;  %v1391_v40 = vadd.f32 %v1390_v36, %v441_v33  ;;  %v472_v31 = vld [vmem:[#allocation3 + $0xd90] sm:$0xff]  ;;  %v473_v33 = vld [vmem:[#allocation3 + $0xd98] sm:$0xff] }
 0x19a   :  { %v1009_v42 = vadd.f32 %v1008_v38, %v442_v35  ;;  %v1392_v44 = vadd.f32 %v1391_v40, %v443_v37  ;;  %v474_v35 = vld [vmem:[#allocation3 + $0xda0] sm:$0xff]  ;;  %v475_v37 = vld [vmem:[#allocation3 + $0xda8] sm:$0xff] }
 0x19c   :  { %v1010_v46 = vadd.f32 %v1009_v42, %v444_v39  ;;  %v1393_v48 = vadd.f32 %v1392_v44, %v445_v41  ;;  %v476_v39 = vld [vmem:[#allocation3 + $0xdb0] sm:$0xff]  ;;  %v477_v41 = vld [vmem:[#allocation3 + $0xdb8] sm:$0xff] }
 0x19e   :  { %v1011_v50 = vadd.f32 %v1010_v46, %v446_v43  ;;  %v1394_v52 = vadd.f32 %v1393_v48, %v447_v45  ;;  %v478_v43 = vld [vmem:[#allocation3 + $0xdc0] sm:$0xff]  ;;  %v479_v45 = vld [vmem:[#allocation3 + $0xdc8] sm:$0xff] }
 0x1a0   :  { %v1012_v54 = vadd.f32 %v1011_v50, %v448_v47  ;;  %v1395_v56 = vadd.f32 %v1394_v52, %v449_v49  ;;  %v480_v47 = vld [vmem:[#allocation3 + $0xdd0] sm:$0xff]  ;;  %v481_v49 = vld [vmem:[#allocation3 + $0xdd8] sm:$0xff] }
 0x1a2   :  { %v1013_v58 = vadd.f32 %v1012_v54, %v450_v51  ;;  %v1396_v60 = vadd.f32 %v1395_v56, %v451_v53  ;;  %v482_v51 = vld [vmem:[#allocation3 + $0xde0] sm:$0xff]  ;;  %v483_v53 = vld [vmem:[#allocation3 + $0xde8] sm:$0xff] }
 0x1a4   :  { %v1014_v62 = vadd.f32 %v1013_v58, %v452_v55  ;;  %v1397_v0 = vadd.f32 %v1396_v60, %v453_v57  ;;  %v484_v55 = vld [vmem:[#allocation3 + $0xdf0] sm:$0xff]  ;;  %v485_v57 = vld [vmem:[#allocation3 + $0xdf8] sm:$0xff] }
 0x1a6   :  { %v1015_v2 = vadd.f32 %v1014_v62, %v454_v59  ;;  %v1398_v4 = vadd.f32 %v1397_v0, %v455_v61  ;;  %v486_v59 = vld [vmem:[#allocation3 + $0xe00] sm:$0xff]  ;;  %v487_v61 = vld [vmem:[#allocation3 + $0xe08] sm:$0xff] }
 0x1a8   :  { %v1016_v6 = vadd.f32 %v1015_v2, %v456_v63  ;;  %v1399_v8 = vadd.f32 %v1398_v4, %v457_v1  ;;  %v488_v63 = vld [vmem:[#allocation3 + $0xe10] sm:$0xff]  ;;  %v489_v1 = vld [vmem:[#allocation3 + $0xe18] sm:$0xff] }
 0x1aa   :  { %v1017_v10 = vadd.f32 %v1016_v6, %v458_v3  ;;  %v1400_v12 = vadd.f32 %v1399_v8, %v459_v5  ;;  %v490_v3 = vld [vmem:[#allocation3 + $0xe20] sm:$0xff]  ;;  %v491_v5 = vld [vmem:[#allocation3 + $0xe28] sm:$0xff] }
 0x1ac   :  { %v1018_v14 = vadd.f32 %v1017_v10, %v460_v7  ;;  %v1401_v16 = vadd.f32 %v1400_v12, %v461_v9  ;;  %v492_v7 = vld [vmem:[#allocation3 + $0xe30] sm:$0xff]  ;;  %v493_v9 = vld [vmem:[#allocation3 + $0xe38] sm:$0xff] }
 0x1ae   :  { %v1019_v18 = vadd.f32 %v1018_v14, %v462_v11  ;;  %v1402_v20 = vadd.f32 %v1401_v16, %v463_v13  ;;  %v494_v11 = vld [vmem:[#allocation3 + $0xe40] sm:$0xff]  ;;  %v495_v13 = vld [vmem:[#allocation3 + $0xe48] sm:$0xff] }
 0x1b0   :  { %v1020_v22 = vadd.f32 %v1019_v18, %v464_v15  ;;  %v1403_v24 = vadd.f32 %v1402_v20, %v465_v17  ;;  %v496_v15 = vld [vmem:[#allocation3 + $0xe50] sm:$0xff]  ;;  %v497_v17 = vld [vmem:[#allocation3 + $0xe58] sm:$0xff] }
 0x1b2   :  { %v1021_v26 = vadd.f32 %v1020_v22, %v466_v19  ;;  %v1404_v28 = vadd.f32 %v1403_v24, %v467_v21  ;;  %v498_v19 = vld [vmem:[#allocation3 + $0xe60] sm:$0xff]  ;;  %v499_v21 = vld [vmem:[#allocation3 + $0xe68] sm:$0xff] }
 0x1b4   :  { %v1022_v30 = vadd.f32 %v1021_v26, %v468_v23  ;;  %v1405_v32 = vadd.f32 %v1404_v28, %v469_v25  ;;  %v500_v23 = vld [vmem:[#allocation3 + $0xe70] sm:$0xff]  ;;  %v501_v25 = vld [vmem:[#allocation3 + $0xe78] sm:$0xff] }
 0x1b6   :  { %v1023_v34 = vadd.f32 %v1022_v30, %v470_v27  ;;  %v1406_v36 = vadd.f32 %v1405_v32, %v471_v29  ;;  %v502_v27 = vld [vmem:[#allocation3 + $0xe80] sm:$0xff]  ;;  %v503_v29 = vld [vmem:[#allocation3 + $0xe88] sm:$0xff] }
 0x1b8   :  { %v1024_v38 = vadd.f32 %v1023_v34, %v472_v31  ;;  %v1407_v40 = vadd.f32 %v1406_v36, %v473_v33  ;;  %v504_v31 = vld [vmem:[#allocation3 + $0xe90] sm:$0xff]  ;;  %v505_v33 = vld [vmem:[#allocation3 + $0xe98] sm:$0xff] }
 0x1ba   :  { %v1025_v42 = vadd.f32 %v1024_v38, %v474_v35  ;;  %v1408_v44 = vadd.f32 %v1407_v40, %v475_v37  ;;  %v506_v35 = vld [vmem:[#allocation3 + $0xea0] sm:$0xff]  ;;  %v507_v37 = vld [vmem:[#allocation3 + $0xea8] sm:$0xff] }
 0x1bc   :  { %v1026_v46 = vadd.f32 %v1025_v42, %v476_v39  ;;  %v1409_v48 = vadd.f32 %v1408_v44, %v477_v41  ;;  %v508_v39 = vld [vmem:[#allocation3 + $0xeb0] sm:$0xff]  ;;  %v509_v41 = vld [vmem:[#allocation3 + $0xeb8] sm:$0xff] }
 0x1be   :  { %v1027_v50 = vadd.f32 %v1026_v46, %v478_v43  ;;  %v1410_v52 = vadd.f32 %v1409_v48, %v479_v45  ;;  %v510_v43 = vld [vmem:[#allocation3 + $0xec0] sm:$0xff]  ;;  %v511_v45 = vld [vmem:[#allocation3 + $0xec8] sm:$0xff] }
 0x1c0   :  { %v1028_v54 = vadd.f32 %v1027_v50, %v480_v47  ;;  %v1411_v56 = vadd.f32 %v1410_v52, %v481_v49  ;;  %v512_v47 = vld [vmem:[#allocation3 + $0xed0] sm:$0xff]  ;;  %v513_v49 = vld [vmem:[#allocation3 + $0xed8] sm:$0xff] }
 0x1c2   :  { %v1029_v58 = vadd.f32 %v1028_v54, %v482_v51  ;;  %v1412_v60 = vadd.f32 %v1411_v56, %v483_v53  ;;  %v514_v51 = vld [vmem:[#allocation3 + $0xee0] sm:$0xff]  ;;  %v515_v53 = vld [vmem:[#allocation3 + $0xee8] sm:$0xff] }
 0x1c4   :  { %v1030_v62 = vadd.f32 %v1029_v58, %v484_v55  ;;  %v1413_v0 = vadd.f32 %v1412_v60, %v485_v57  ;;  %v516_v55 = vld [vmem:[#allocation3 + $0xef0] sm:$0xff]  ;;  %v517_v57 = vld [vmem:[#allocation3 + $0xef8] sm:$0xff] }
 0x1c6   :  { %v1031_v2 = vadd.f32 %v1030_v62, %v486_v59  ;;  %v1414_v4 = vadd.f32 %v1413_v0, %v487_v61  ;;  %v518_v59 = vld [vmem:[#allocation3 + $0xf00] sm:$0xff]  ;;  %v519_v61 = vld [vmem:[#allocation3 + $0xf08] sm:$0xff] }
 0x1c8   :  { %v1032_v6 = vadd.f32 %v1031_v2, %v488_v63  ;;  %v1415_v8 = vadd.f32 %v1414_v4, %v489_v1  ;;  %v520_v63 = vld [vmem:[#allocation3 + $0xf10] sm:$0xff]  ;;  %v521_v1 = vld [vmem:[#allocation3 + $0xf18] sm:$0xff] }
 0x1ca   :  { %v1033_v10 = vadd.f32 %v1032_v6, %v490_v3  ;;  %v1416_v12 = vadd.f32 %v1415_v8, %v491_v5  ;;  %v522_v3 = vld [vmem:[#allocation3 + $0xf20] sm:$0xff]  ;;  %v523_v5 = vld [vmem:[#allocation3 + $0xf28] sm:$0xff] }
 0x1cc   :  { %v1034_v14 = vadd.f32 %v1033_v10, %v492_v7  ;;  %v1417_v16 = vadd.f32 %v1416_v12, %v493_v9  ;;  %v524_v7 = vld [vmem:[#allocation3 + $0xf30] sm:$0xff]  ;;  %v525_v9 = vld [vmem:[#allocation3 + $0xf38] sm:$0xff] }
 0x1ce   :  { %v1035_v18 = vadd.f32 %v1034_v14, %v494_v11  ;;  %v1418_v20 = vadd.f32 %v1417_v16, %v495_v13  ;;  %v526_v11 = vld [vmem:[#allocation3 + $0xf40] sm:$0xff]  ;;  %v527_v13 = vld [vmem:[#allocation3 + $0xf48] sm:$0xff] }
 0x1d0   :  { %v1036_v22 = vadd.f32 %v1035_v18, %v496_v15  ;;  %v1419_v24 = vadd.f32 %v1418_v20, %v497_v17  ;;  %v528_v15 = vld [vmem:[#allocation3 + $0xf50] sm:$0xff]  ;;  %v529_v17 = vld [vmem:[#allocation3 + $0xf58] sm:$0xff] }
 0x1d2   :  { %v1037_v26 = vadd.f32 %v1036_v22, %v498_v19  ;;  %v1420_v28 = vadd.f32 %v1419_v24, %v499_v21  ;;  %v530_v19 = vld [vmem:[#allocation3 + $0xf60] sm:$0xff]  ;;  %v531_v21 = vld [vmem:[#allocation3 + $0xf68] sm:$0xff] }
 0x1d4   :  { %v1038_v30 = vadd.f32 %v1037_v26, %v500_v23  ;;  %v1421_v32 = vadd.f32 %v1420_v28, %v501_v25  ;;  %v532_v23 = vld [vmem:[#allocation3 + $0xf70] sm:$0xff]  ;;  %v533_v25 = vld [vmem:[#allocation3 + $0xf78] sm:$0xff] }
 0x1d6   :  { %v1039_v34 = vadd.f32 %v1038_v30, %v502_v27  ;;  %v1422_v36 = vadd.f32 %v1421_v32, %v503_v29  ;;  %v534_v27 = vld [vmem:[#allocation3 + $0xf80] sm:$0xff]  ;;  %v535_v29 = vld [vmem:[#allocation3 + $0xf88] sm:$0xff] }
 0x1d8   :  { %v1040_v38 = vadd.f32 %v1039_v34, %v504_v31  ;;  %v1423_v40 = vadd.f32 %v1422_v36, %v505_v33  ;;  %v536_v31 = vld [vmem:[#allocation3 + $0xf90] sm:$0xff]  ;;  %v537_v33 = vld [vmem:[#allocation3 + $0xf98] sm:$0xff] }
 0x1da   :  { %v1041_v42 = vadd.f32 %v1040_v38, %v506_v35  ;;  %v1424_v44 = vadd.f32 %v1423_v40, %v507_v37  ;;  %v538_v35 = vld [vmem:[#allocation3 + $0xfa0] sm:$0xff]  ;;  %v539_v37 = vld [vmem:[#allocation3 + $0xfa8] sm:$0xff] }
 0x1dc   :  { %v1042_v46 = vadd.f32 %v1041_v42, %v508_v39  ;;  %v1425_v48 = vadd.f32 %v1424_v44, %v509_v41  ;;  %v540_v39 = vld [vmem:[#allocation3 + $0xfb0] sm:$0xff]  ;;  %v541_v41 = vld [vmem:[#allocation3 + $0xfb8] sm:$0xff] }
 0x1de   :  { %v1043_v50 = vadd.f32 %v1042_v46, %v510_v43  ;;  %v1426_v52 = vadd.f32 %v1425_v48, %v511_v45  ;;  %v542_v43 = vld [vmem:[#allocation3 + $0xfc0] sm:$0xff]  ;;  %v543_v45 = vld [vmem:[#allocation3 + $0xfc8] sm:$0xff] }
 0x1e0   :  { %v1044_v54 = vadd.f32 %v1043_v50, %v512_v47  ;;  %v1427_v56 = vadd.f32 %v1426_v52, %v513_v49  ;;  %v544_v47 = vld [vmem:[#allocation3 + $0xfd0] sm:$0xff]  ;;  %v545_v49 = vld [vmem:[#allocation3 + $0xfd8] sm:$0xff] }
 0x1e2   :  { %v1045_v58 = vadd.f32 %v1044_v54, %v514_v51  ;;  %v1428_v60 = vadd.f32 %v1427_v56, %v515_v53  ;;  %v546_v51 = vld [vmem:[#allocation3 + $0xfe0] sm:$0xff]  ;;  %v547_v53 = vld [vmem:[#allocation3 + $0xfe8] sm:$0xff] }
 0x1e4   :  { %v1046_v62 = vadd.f32 %v1045_v58, %v516_v55  ;;  %v1429_v0 = vadd.f32 %v1428_v60, %v517_v57  ;;  %v548_v55 = vld [vmem:[#allocation3 + $0xff0] sm:$0xff]  ;;  %v549_v57 = vld [vmem:[#allocation3 + $0xff8] sm:$0xff] }
 0x1e6   :  { %v1047_v2 = vadd.f32 %v1046_v62, %v518_v59  ;;  %v1430_v4 = vadd.f32 %v1429_v0, %v519_v61  ;;  %v550_v59 = vld [vmem:[#allocation3 + $0x1000] sm:$0xff]  ;;  %v551_v61 = vld [vmem:[#allocation3 + $0x1008] sm:$0xff] }
 0x1e8   :  { %v1048_v6 = vadd.f32 %v1047_v2, %v520_v63  ;;  %v1431_v8 = vadd.f32 %v1430_v4, %v521_v1  ;;  %v552_v63 = vld [vmem:[#allocation3 + $0x1010] sm:$0xff]  ;;  %v553_v1 = vld [vmem:[#allocation3 + $0x1018] sm:$0xff] }
 0x1ea   :  { %v1049_v10 = vadd.f32 %v1048_v6, %v522_v3  ;;  %v1432_v12 = vadd.f32 %v1431_v8, %v523_v5  ;;  %v554_v3 = vld [vmem:[#allocation3 + $0x1020] sm:$0xff]  ;;  %v555_v5 = vld [vmem:[#allocation3 + $0x1028] sm:$0xff] }
 0x1ec   :  { %v1050_v14 = vadd.f32 %v1049_v10, %v524_v7  ;;  %v1433_v16 = vadd.f32 %v1432_v12, %v525_v9  ;;  %v556_v7 = vld [vmem:[#allocation3 + $0x1030] sm:$0xff]  ;;  %v557_v9 = vld [vmem:[#allocation3 + $0x1038] sm:$0xff] }
 0x1ee   :  { %v1051_v18 = vadd.f32 %v1050_v14, %v526_v11  ;;  %v1434_v20 = vadd.f32 %v1433_v16, %v527_v13  ;;  %v558_v11 = vld [vmem:[#allocation3 + $0x1040] sm:$0xff]  ;;  %v559_v13 = vld [vmem:[#allocation3 + $0x1048] sm:$0xff] }
 0x1f0   :  { %v1052_v22 = vadd.f32 %v1051_v18, %v528_v15  ;;  %v1435_v24 = vadd.f32 %v1434_v20, %v529_v17  ;;  %v560_v15 = vld [vmem:[#allocation3 + $0x1050] sm:$0xff]  ;;  %v561_v17 = vld [vmem:[#allocation3 + $0x1058] sm:$0xff] }
 0x1f2   :  { %v1053_v26 = vadd.f32 %v1052_v22, %v530_v19  ;;  %v1436_v28 = vadd.f32 %v1435_v24, %v531_v21  ;;  %v562_v19 = vld [vmem:[#allocation3 + $0x1060] sm:$0xff]  ;;  %v563_v21 = vld [vmem:[#allocation3 + $0x1068] sm:$0xff] }
 0x1f4   :  { %v1054_v30 = vadd.f32 %v1053_v26, %v532_v23  ;;  %v1437_v32 = vadd.f32 %v1436_v28, %v533_v25  ;;  %v564_v23 = vld [vmem:[#allocation3 + $0x1070] sm:$0xff]  ;;  %v565_v25 = vld [vmem:[#allocation3 + $0x1078] sm:$0xff] }
 0x1f6   :  { %v1055_v34 = vadd.f32 %v1054_v30, %v534_v27  ;;  %v1438_v36 = vadd.f32 %v1437_v32, %v535_v29  ;;  %v566_v27 = vld [vmem:[#allocation3 + $0x1080] sm:$0xff]  ;;  %v567_v29 = vld [vmem:[#allocation3 + $0x1088] sm:$0xff] }
 0x1f8   :  { %v1056_v38 = vadd.f32 %v1055_v34, %v536_v31  ;;  %v1439_v40 = vadd.f32 %v1438_v36, %v537_v33  ;;  %v568_v31 = vld [vmem:[#allocation3 + $0x1090] sm:$0xff]  ;;  %v569_v33 = vld [vmem:[#allocation3 + $0x1098] sm:$0xff] }
 0x1fa   :  { %v1057_v42 = vadd.f32 %v1056_v38, %v538_v35  ;;  %v1440_v44 = vadd.f32 %v1439_v40, %v539_v37  ;;  %v570_v35 = vld [vmem:[#allocation3 + $0x10a0] sm:$0xff]  ;;  %v571_v37 = vld [vmem:[#allocation3 + $0x10a8] sm:$0xff] }
 0x1fc   :  { %v1058_v46 = vadd.f32 %v1057_v42, %v540_v39  ;;  %v1441_v48 = vadd.f32 %v1440_v44, %v541_v41  ;;  %v572_v39 = vld [vmem:[#allocation3 + $0x10b0] sm:$0xff]  ;;  %v573_v41 = vld [vmem:[#allocation3 + $0x10b8] sm:$0xff] }
 0x1fe   :  { %v1059_v50 = vadd.f32 %v1058_v46, %v542_v43  ;;  %v1442_v52 = vadd.f32 %v1441_v48, %v543_v45  ;;  %v574_v43 = vld [vmem:[#allocation3 + $0x10c0] sm:$0xff]  ;;  %v575_v45 = vld [vmem:[#allocation3 + $0x10c8] sm:$0xff] }
 0x200   :  { %v1060_v54 = vadd.f32 %v1059_v50, %v544_v47  ;;  %v1443_v56 = vadd.f32 %v1442_v52, %v545_v49  ;;  %v576_v47 = vld [vmem:[#allocation3 + $0x10d0] sm:$0xff]  ;;  %v577_v49 = vld [vmem:[#allocation3 + $0x10d8] sm:$0xff] }
 0x202   :  { %v1061_v58 = vadd.f32 %v1060_v54, %v546_v51  ;;  %v1444_v60 = vadd.f32 %v1443_v56, %v547_v53  ;;  %v578_v51 = vld [vmem:[#allocation3 + $0x10e0] sm:$0xff]  ;;  %v579_v53 = vld [vmem:[#allocation3 + $0x10e8] sm:$0xff] }
 0x204   :  { %v1062_v62 = vadd.f32 %v1061_v58, %v548_v55  ;;  %v1445_v0 = vadd.f32 %v1444_v60, %v549_v57  ;;  %v580_v55 = vld [vmem:[#allocation3 + $0x10f0] sm:$0xff]  ;;  %v581_v57 = vld [vmem:[#allocation3 + $0x10f8] sm:$0xff] }
 0x206   :  { %v1063_v2 = vadd.f32 %v1062_v62, %v550_v59  ;;  %v1446_v4 = vadd.f32 %v1445_v0, %v551_v61  ;;  %v582_v59 = vld [vmem:[#allocation3 + $0x1100] sm:$0xff]  ;;  %v583_v61 = vld [vmem:[#allocation3 + $0x1108] sm:$0xff] }
 0x208   :  { %v1064_v6 = vadd.f32 %v1063_v2, %v552_v63  ;;  %v1447_v8 = vadd.f32 %v1446_v4, %v553_v1  ;;  %v584_v63 = vld [vmem:[#allocation3 + $0x1110] sm:$0xff]  ;;  %v585_v1 = vld [vmem:[#allocation3 + $0x1118] sm:$0xff] }
 0x20a   :  { %v1065_v10 = vadd.f32 %v1064_v6, %v554_v3  ;;  %v1448_v12 = vadd.f32 %v1447_v8, %v555_v5  ;;  %v586_v3 = vld [vmem:[#allocation3 + $0x1120] sm:$0xff]  ;;  %v587_v5 = vld [vmem:[#allocation3 + $0x1128] sm:$0xff] }
 0x20c   :  { %v1066_v14 = vadd.f32 %v1065_v10, %v556_v7  ;;  %v1449_v16 = vadd.f32 %v1448_v12, %v557_v9  ;;  %v588_v7 = vld [vmem:[#allocation3 + $0x1130] sm:$0xff]  ;;  %v589_v9 = vld [vmem:[#allocation3 + $0x1138] sm:$0xff] }
 0x20e   :  { %v1067_v18 = vadd.f32 %v1066_v14, %v558_v11  ;;  %v1450_v20 = vadd.f32 %v1449_v16, %v559_v13  ;;  %v590_v11 = vld [vmem:[#allocation3 + $0x1140] sm:$0xff]  ;;  %v591_v13 = vld [vmem:[#allocation3 + $0x1148] sm:$0xff] }
 0x210   :  { %v1068_v22 = vadd.f32 %v1067_v18, %v560_v15  ;;  %v1451_v24 = vadd.f32 %v1450_v20, %v561_v17  ;;  %v592_v15 = vld [vmem:[#allocation3 + $0x1150] sm:$0xff]  ;;  %v593_v17 = vld [vmem:[#allocation3 + $0x1158] sm:$0xff] }
 0x212   :  { %v1069_v26 = vadd.f32 %v1068_v22, %v562_v19  ;;  %v1452_v28 = vadd.f32 %v1451_v24, %v563_v21  ;;  %v594_v19 = vld [vmem:[#allocation3 + $0x1160] sm:$0xff]  ;;  %v595_v21 = vld [vmem:[#allocation3 + $0x1168] sm:$0xff] }
 0x214   :  { %v1070_v30 = vadd.f32 %v1069_v26, %v564_v23  ;;  %v1453_v32 = vadd.f32 %v1452_v28, %v565_v25  ;;  %v596_v23 = vld [vmem:[#allocation3 + $0x1170] sm:$0xff]  ;;  %v597_v25 = vld [vmem:[#allocation3 + $0x1178] sm:$0xff] }
 0x216   :  { %v1071_v34 = vadd.f32 %v1070_v30, %v566_v27  ;;  %v1454_v36 = vadd.f32 %v1453_v32, %v567_v29  ;;  %v598_v27 = vld [vmem:[#allocation3 + $0x1180] sm:$0xff]  ;;  %v599_v29 = vld [vmem:[#allocation3 + $0x1188] sm:$0xff] }
 0x218   :  { %v1072_v38 = vadd.f32 %v1071_v34, %v568_v31  ;;  %v1455_v40 = vadd.f32 %v1454_v36, %v569_v33  ;;  %v600_v31 = vld [vmem:[#allocation3 + $0x1190] sm:$0xff]  ;;  %v601_v33 = vld [vmem:[#allocation3 + $0x1198] sm:$0xff] }
 0x21a   :  { %v1073_v42 = vadd.f32 %v1072_v38, %v570_v35  ;;  %v1456_v44 = vadd.f32 %v1455_v40, %v571_v37  ;;  %v602_v35 = vld [vmem:[#allocation3 + $0x11a0] sm:$0xff]  ;;  %v603_v37 = vld [vmem:[#allocation3 + $0x11a8] sm:$0xff] }
 0x21c   :  { %v1074_v46 = vadd.f32 %v1073_v42, %v572_v39  ;;  %v1457_v48 = vadd.f32 %v1456_v44, %v573_v41  ;;  %v604_v39 = vld [vmem:[#allocation3 + $0x11b0] sm:$0xff]  ;;  %v605_v41 = vld [vmem:[#allocation3 + $0x11b8] sm:$0xff] }
 0x21e   :  { %v1075_v50 = vadd.f32 %v1074_v46, %v574_v43  ;;  %v1458_v52 = vadd.f32 %v1457_v48, %v575_v45  ;;  %v606_v43 = vld [vmem:[#allocation3 + $0x11c0] sm:$0xff]  ;;  %v607_v45 = vld [vmem:[#allocation3 + $0x11c8] sm:$0xff] }
 0x220   :  { %v1076_v54 = vadd.f32 %v1075_v50, %v576_v47  ;;  %v1459_v56 = vadd.f32 %v1458_v52, %v577_v49  ;;  %v608_v47 = vld [vmem:[#allocation3 + $0x11d0] sm:$0xff]  ;;  %v609_v49 = vld [vmem:[#allocation3 + $0x11d8] sm:$0xff] }
 0x222   :  { %v1077_v58 = vadd.f32 %v1076_v54, %v578_v51  ;;  %v1460_v60 = vadd.f32 %v1459_v56, %v579_v53  ;;  %v610_v51 = vld [vmem:[#allocation3 + $0x11e0] sm:$0xff]  ;;  %v611_v53 = vld [vmem:[#allocation3 + $0x11e8] sm:$0xff] }
 0x224   :  { %v1078_v62 = vadd.f32 %v1077_v58, %v580_v55  ;;  %v1461_v0 = vadd.f32 %v1460_v60, %v581_v57  ;;  %v612_v55 = vld [vmem:[#allocation3 + $0x11f0] sm:$0xff]  ;;  %v613_v57 = vld [vmem:[#allocation3 + $0x11f8] sm:$0xff] }
 0x226   :  { %v1079_v2 = vadd.f32 %v1078_v62, %v582_v59  ;;  %v1462_v4 = vadd.f32 %v1461_v0, %v583_v61  ;;  %v614_v59 = vld [vmem:[#allocation3 + $0x1200] sm:$0xff]  ;;  %v615_v61 = vld [vmem:[#allocation3 + $0x1208] sm:$0xff] }
 0x228   :  { %v1080_v6 = vadd.f32 %v1079_v2, %v584_v63  ;;  %v1463_v8 = vadd.f32 %v1462_v4, %v585_v1  ;;  %v616_v63 = vld [vmem:[#allocation3 + $0x1210] sm:$0xff]  ;;  %v617_v1 = vld [vmem:[#allocation3 + $0x1218] sm:$0xff] }
 0x22a   :  { %v1081_v10 = vadd.f32 %v1080_v6, %v586_v3  ;;  %v1464_v12 = vadd.f32 %v1463_v8, %v587_v5  ;;  %v618_v3 = vld [vmem:[#allocation3 + $0x1220] sm:$0xff]  ;;  %v619_v5 = vld [vmem:[#allocation3 + $0x1228] sm:$0xff] }
 0x22c   :  { %v1082_v14 = vadd.f32 %v1081_v10, %v588_v7  ;;  %v1465_v16 = vadd.f32 %v1464_v12, %v589_v9  ;;  %v620_v7 = vld [vmem:[#allocation3 + $0x1230] sm:$0xff]  ;;  %v621_v9 = vld [vmem:[#allocation3 + $0x1238] sm:$0xff] }
 0x22e   :  { %v1083_v18 = vadd.f32 %v1082_v14, %v590_v11  ;;  %v1466_v20 = vadd.f32 %v1465_v16, %v591_v13  ;;  %v622_v11 = vld [vmem:[#allocation3 + $0x1240] sm:$0xff]  ;;  %v623_v13 = vld [vmem:[#allocation3 + $0x1248] sm:$0xff] }
 0x230   :  { %v1084_v22 = vadd.f32 %v1083_v18, %v592_v15  ;;  %v1467_v24 = vadd.f32 %v1466_v20, %v593_v17  ;;  %v624_v15 = vld [vmem:[#allocation3 + $0x1250] sm:$0xff]  ;;  %v625_v17 = vld [vmem:[#allocation3 + $0x1258] sm:$0xff] }
 0x232   :  { %v1085_v26 = vadd.f32 %v1084_v22, %v594_v19  ;;  %v1468_v28 = vadd.f32 %v1467_v24, %v595_v21  ;;  %v626_v19 = vld [vmem:[#allocation3 + $0x1260] sm:$0xff]  ;;  %v627_v21 = vld [vmem:[#allocation3 + $0x1268] sm:$0xff] }
 0x234   :  { %v1086_v30 = vadd.f32 %v1085_v26, %v596_v23  ;;  %v1469_v32 = vadd.f32 %v1468_v28, %v597_v25  ;;  %v628_v23 = vld [vmem:[#allocation3 + $0x1270] sm:$0xff]  ;;  %v629_v25 = vld [vmem:[#allocation3 + $0x1278] sm:$0xff] }
 0x236   :  { %v1087_v34 = vadd.f32 %v1086_v30, %v598_v27  ;;  %v1470_v36 = vadd.f32 %v1469_v32, %v599_v29  ;;  %v630_v27 = vld [vmem:[#allocation3 + $0x1280] sm:$0xff]  ;;  %v631_v29 = vld [vmem:[#allocation3 + $0x1288] sm:$0xff] }
 0x238   :  { %v1088_v38 = vadd.f32 %v1087_v34, %v600_v31  ;;  %v1471_v40 = vadd.f32 %v1470_v36, %v601_v33  ;;  %v632_v31 = vld [vmem:[#allocation3 + $0x1290] sm:$0xff]  ;;  %v633_v33 = vld [vmem:[#allocation3 + $0x1298] sm:$0xff] }
 0x23a   :  { %v1089_v42 = vadd.f32 %v1088_v38, %v602_v35  ;;  %v1472_v44 = vadd.f32 %v1471_v40, %v603_v37  ;;  %v634_v35 = vld [vmem:[#allocation3 + $0x12a0] sm:$0xff]  ;;  %v635_v37 = vld [vmem:[#allocation3 + $0x12a8] sm:$0xff] }
 0x23c   :  { %v1090_v46 = vadd.f32 %v1089_v42, %v604_v39  ;;  %v1473_v48 = vadd.f32 %v1472_v44, %v605_v41  ;;  %v636_v39 = vld [vmem:[#allocation3 + $0x12b0] sm:$0xff]  ;;  %v637_v41 = vld [vmem:[#allocation3 + $0x12b8] sm:$0xff] }
 0x23e   :  { %v1091_v50 = vadd.f32 %v1090_v46, %v606_v43  ;;  %v1474_v52 = vadd.f32 %v1473_v48, %v607_v45  ;;  %v638_v43 = vld [vmem:[#allocation3 + $0x12c0] sm:$0xff]  ;;  %v639_v45 = vld [vmem:[#allocation3 + $0x12c8] sm:$0xff] }
 0x240   :  { %v1092_v54 = vadd.f32 %v1091_v50, %v608_v47  ;;  %v1475_v56 = vadd.f32 %v1474_v52, %v609_v49  ;;  %v640_v47 = vld [vmem:[#allocation3 + $0x12d0] sm:$0xff]  ;;  %v641_v49 = vld [vmem:[#allocation3 + $0x12d8] sm:$0xff] }
 0x242   :  { %v1093_v58 = vadd.f32 %v1092_v54, %v610_v51  ;;  %v1476_v60 = vadd.f32 %v1475_v56, %v611_v53  ;;  %v642_v51 = vld [vmem:[#allocation3 + $0x12e0] sm:$0xff]  ;;  %v643_v53 = vld [vmem:[#allocation3 + $0x12e8] sm:$0xff] }
 0x244   :  { %v1094_v62 = vadd.f32 %v1093_v58, %v612_v55  ;;  %v1477_v0 = vadd.f32 %v1476_v60, %v613_v57  ;;  %v644_v55 = vld [vmem:[#allocation3 + $0x12f0] sm:$0xff]  ;;  %v645_v57 = vld [vmem:[#allocation3 + $0x12f8] sm:$0xff] }
 0x246   :  { %v1095_v2 = vadd.f32 %v1094_v62, %v614_v59  ;;  %v1478_v4 = vadd.f32 %v1477_v0, %v615_v61  ;;  %v646_v59 = vld [vmem:[#allocation3 + $0x1300] sm:$0xff]  ;;  %v647_v61 = vld [vmem:[#allocation3 + $0x1308] sm:$0xff] }
 0x248   :  { %v1096_v6 = vadd.f32 %v1095_v2, %v616_v63  ;;  %v1479_v8 = vadd.f32 %v1478_v4, %v617_v1  ;;  %v648_v63 = vld [vmem:[#allocation3 + $0x1310] sm:$0xff]  ;;  %v649_v1 = vld [vmem:[#allocation3 + $0x1318] sm:$0xff] }
 0x24a   :  { %v1097_v10 = vadd.f32 %v1096_v6, %v618_v3  ;;  %v1480_v12 = vadd.f32 %v1479_v8, %v619_v5  ;;  %v650_v3 = vld [vmem:[#allocation3 + $0x1320] sm:$0xff]  ;;  %v651_v5 = vld [vmem:[#allocation3 + $0x1328] sm:$0xff] }
 0x24c   :  { %v1098_v14 = vadd.f32 %v1097_v10, %v620_v7  ;;  %v1481_v16 = vadd.f32 %v1480_v12, %v621_v9  ;;  %v652_v7 = vld [vmem:[#allocation3 + $0x1330] sm:$0xff]  ;;  %v653_v9 = vld [vmem:[#allocation3 + $0x1338] sm:$0xff] }
 0x24e   :  { %v1099_v18 = vadd.f32 %v1098_v14, %v622_v11  ;;  %v1482_v20 = vadd.f32 %v1481_v16, %v623_v13  ;;  %v654_v11 = vld [vmem:[#allocation3 + $0x1340] sm:$0xff]  ;;  %v655_v13 = vld [vmem:[#allocation3 + $0x1348] sm:$0xff] }
 0x250   :  { %v1100_v22 = vadd.f32 %v1099_v18, %v624_v15  ;;  %v1483_v24 = vadd.f32 %v1482_v20, %v625_v17  ;;  %v656_v15 = vld [vmem:[#allocation3 + $0x1350] sm:$0xff]  ;;  %v657_v17 = vld [vmem:[#allocation3 + $0x1358] sm:$0xff] }
 0x252   :  { %v1101_v26 = vadd.f32 %v1100_v22, %v626_v19  ;;  %v1484_v28 = vadd.f32 %v1483_v24, %v627_v21  ;;  %v658_v19 = vld [vmem:[#allocation3 + $0x1360] sm:$0xff]  ;;  %v659_v21 = vld [vmem:[#allocation3 + $0x1368] sm:$0xff] }
 0x254   :  { %v1102_v30 = vadd.f32 %v1101_v26, %v628_v23  ;;  %v1485_v32 = vadd.f32 %v1484_v28, %v629_v25  ;;  %v660_v23 = vld [vmem:[#allocation3 + $0x1370] sm:$0xff]  ;;  %v661_v25 = vld [vmem:[#allocation3 + $0x1378] sm:$0xff] }
 0x256   :  { %v1103_v34 = vadd.f32 %v1102_v30, %v630_v27  ;;  %v1486_v36 = vadd.f32 %v1485_v32, %v631_v29  ;;  %v662_v27 = vld [vmem:[#allocation3 + $0x1380] sm:$0xff]  ;;  %v663_v29 = vld [vmem:[#allocation3 + $0x1388] sm:$0xff] }
 0x258   :  { %v1104_v38 = vadd.f32 %v1103_v34, %v632_v31  ;;  %v1487_v40 = vadd.f32 %v1486_v36, %v633_v33  ;;  %v664_v31 = vld [vmem:[#allocation3 + $0x1390] sm:$0xff]  ;;  %v665_v33 = vld [vmem:[#allocation3 + $0x1398] sm:$0xff] }
 0x25a   :  { %v1105_v42 = vadd.f32 %v1104_v38, %v634_v35  ;;  %v1488_v44 = vadd.f32 %v1487_v40, %v635_v37  ;;  %v666_v35 = vld [vmem:[#allocation3 + $0x13a0] sm:$0xff]  ;;  %v667_v37 = vld [vmem:[#allocation3 + $0x13a8] sm:$0xff] }
 0x25c   :  { %v1106_v46 = vadd.f32 %v1105_v42, %v636_v39  ;;  %v1489_v48 = vadd.f32 %v1488_v44, %v637_v41  ;;  %v668_v39 = vld [vmem:[#allocation3 + $0x13b0] sm:$0xff]  ;;  %v669_v41 = vld [vmem:[#allocation3 + $0x13b8] sm:$0xff] }
 0x25e   :  { %v1107_v50 = vadd.f32 %v1106_v46, %v638_v43  ;;  %v1490_v52 = vadd.f32 %v1489_v48, %v639_v45  ;;  %v670_v43 = vld [vmem:[#allocation3 + $0x13c0] sm:$0xff]  ;;  %v671_v45 = vld [vmem:[#allocation3 + $0x13c8] sm:$0xff] }
 0x260   :  { %v1108_v54 = vadd.f32 %v1107_v50, %v640_v47  ;;  %v1491_v56 = vadd.f32 %v1490_v52, %v641_v49  ;;  %v672_v47 = vld [vmem:[#allocation3 + $0x13d0] sm:$0xff]  ;;  %v673_v49 = vld [vmem:[#allocation3 + $0x13d8] sm:$0xff] }
 0x262   :  { %v1109_v58 = vadd.f32 %v1108_v54, %v642_v51  ;;  %v1492_v60 = vadd.f32 %v1491_v56, %v643_v53  ;;  %v674_v51 = vld [vmem:[#allocation3 + $0x13e0] sm:$0xff]  ;;  %v675_v53 = vld [vmem:[#allocation3 + $0x13e8] sm:$0xff] }
 0x264   :  { %v1110_v62 = vadd.f32 %v1109_v58, %v644_v55  ;;  %v1493_v0 = vadd.f32 %v1492_v60, %v645_v57  ;;  %v676_v55 = vld [vmem:[#allocation3 + $0x13f0] sm:$0xff]  ;;  %v677_v57 = vld [vmem:[#allocation3 + $0x13f8] sm:$0xff] }
 0x266   :  { %v1111_v2 = vadd.f32 %v1110_v62, %v646_v59  ;;  %v1494_v4 = vadd.f32 %v1493_v0, %v647_v61  ;;  %v678_v59 = vld [vmem:[#allocation3 + $0x1400] sm:$0xff]  ;;  %v679_v61 = vld [vmem:[#allocation3 + $0x1408] sm:$0xff] }
 0x268   :  { %v1112_v6 = vadd.f32 %v1111_v2, %v648_v63  ;;  %v1495_v8 = vadd.f32 %v1494_v4, %v649_v1  ;;  %v680_v63 = vld [vmem:[#allocation3 + $0x1410] sm:$0xff]  ;;  %v681_v1 = vld [vmem:[#allocation3 + $0x1418] sm:$0xff] }
 0x26a   :  { %v1113_v10 = vadd.f32 %v1112_v6, %v650_v3  ;;  %v1496_v12 = vadd.f32 %v1495_v8, %v651_v5  ;;  %v682_v3 = vld [vmem:[#allocation3 + $0x1420] sm:$0xff]  ;;  %v683_v5 = vld [vmem:[#allocation3 + $0x1428] sm:$0xff] }
 0x26c   :  { %v1114_v14 = vadd.f32 %v1113_v10, %v652_v7  ;;  %v1497_v16 = vadd.f32 %v1496_v12, %v653_v9  ;;  %v684_v7 = vld [vmem:[#allocation3 + $0x1430] sm:$0xff]  ;;  %v685_v9 = vld [vmem:[#allocation3 + $0x1438] sm:$0xff] }
 0x26e   :  { %v1115_v18 = vadd.f32 %v1114_v14, %v654_v11  ;;  %v1498_v20 = vadd.f32 %v1497_v16, %v655_v13  ;;  %v686_v11 = vld [vmem:[#allocation3 + $0x1440] sm:$0xff]  ;;  %v687_v13 = vld [vmem:[#allocation3 + $0x1448] sm:$0xff] }
 0x270   :  { %v1116_v22 = vadd.f32 %v1115_v18, %v656_v15  ;;  %v1499_v24 = vadd.f32 %v1498_v20, %v657_v17  ;;  %v688_v15 = vld [vmem:[#allocation3 + $0x1450] sm:$0xff]  ;;  %v689_v17 = vld [vmem:[#allocation3 + $0x1458] sm:$0xff] }
 0x272   :  { %v1117_v26 = vadd.f32 %v1116_v22, %v658_v19  ;;  %v1500_v28 = vadd.f32 %v1499_v24, %v659_v21  ;;  %v690_v19 = vld [vmem:[#allocation3 + $0x1460] sm:$0xff]  ;;  %v691_v21 = vld [vmem:[#allocation3 + $0x1468] sm:$0xff] }
 0x274   :  { %v1118_v30 = vadd.f32 %v1117_v26, %v660_v23  ;;  %v1501_v32 = vadd.f32 %v1500_v28, %v661_v25  ;;  %v692_v23 = vld [vmem:[#allocation3 + $0x1470] sm:$0xff]  ;;  %v693_v25 = vld [vmem:[#allocation3 + $0x1478] sm:$0xff] }
 0x276   :  { %v1119_v34 = vadd.f32 %v1118_v30, %v662_v27  ;;  %v1502_v36 = vadd.f32 %v1501_v32, %v663_v29  ;;  %v694_v27 = vld [vmem:[#allocation3 + $0x1480] sm:$0xff]  ;;  %v695_v29 = vld [vmem:[#allocation3 + $0x1488] sm:$0xff] }
 0x278   :  { %v1120_v38 = vadd.f32 %v1119_v34, %v664_v31  ;;  %v1503_v40 = vadd.f32 %v1502_v36, %v665_v33  ;;  %v696_v31 = vld [vmem:[#allocation3 + $0x1490] sm:$0xff]  ;;  %v697_v33 = vld [vmem:[#allocation3 + $0x1498] sm:$0xff] }
 0x27a   :  { %v1121_v42 = vadd.f32 %v1120_v38, %v666_v35  ;;  %v1504_v44 = vadd.f32 %v1503_v40, %v667_v37  ;;  %v698_v35 = vld [vmem:[#allocation3 + $0x14a0] sm:$0xff]  ;;  %v699_v37 = vld [vmem:[#allocation3 + $0x14a8] sm:$0xff] }
 0x27c   :  { %v1122_v46 = vadd.f32 %v1121_v42, %v668_v39  ;;  %v1505_v48 = vadd.f32 %v1504_v44, %v669_v41  ;;  %v700_v39 = vld [vmem:[#allocation3 + $0x14b0] sm:$0xff]  ;;  %v701_v41 = vld [vmem:[#allocation3 + $0x14b8] sm:$0xff] }
 0x27e   :  { %v1123_v50 = vadd.f32 %v1122_v46, %v670_v43  ;;  %v1506_v52 = vadd.f32 %v1505_v48, %v671_v45  ;;  %v702_v43 = vld [vmem:[#allocation3 + $0x14c0] sm:$0xff]  ;;  %v703_v45 = vld [vmem:[#allocation3 + $0x14c8] sm:$0xff] }
 0x280   :  { %v1124_v54 = vadd.f32 %v1123_v50, %v672_v47  ;;  %v1507_v56 = vadd.f32 %v1506_v52, %v673_v49  ;;  %v704_v47 = vld [vmem:[#allocation3 + $0x14d0] sm:$0xff]  ;;  %v705_v49 = vld [vmem:[#allocation3 + $0x14d8] sm:$0xff] }
 0x282   :  { %v1125_v58 = vadd.f32 %v1124_v54, %v674_v51  ;;  %v1508_v60 = vadd.f32 %v1507_v56, %v675_v53  ;;  %v706_v51 = vld [vmem:[#allocation3 + $0x14e0] sm:$0xff]  ;;  %v707_v53 = vld [vmem:[#allocation3 + $0x14e8] sm:$0xff] }
 0x284   :  { %v1126_v62 = vadd.f32 %v1125_v58, %v676_v55  ;;  %v1509_v0 = vadd.f32 %v1508_v60, %v677_v57  ;;  %v708_v55 = vld [vmem:[#allocation3 + $0x14f0] sm:$0xff]  ;;  %v709_v57 = vld [vmem:[#allocation3 + $0x14f8] sm:$0xff] }
 0x286   :  { %v1127_v2 = vadd.f32 %v1126_v62, %v678_v59  ;;  %v1510_v4 = vadd.f32 %v1509_v0, %v679_v61  ;;  %v710_v59 = vld [vmem:[#allocation3 + $0x1500] sm:$0xff]  ;;  %v711_v61 = vld [vmem:[#allocation3 + $0x1508] sm:$0xff] }
 0x288   :  { %v1128_v6 = vadd.f32 %v1127_v2, %v680_v63  ;;  %v1511_v8 = vadd.f32 %v1510_v4, %v681_v1  ;;  %v712_v63 = vld [vmem:[#allocation3 + $0x1510] sm:$0xff]  ;;  %v713_v1 = vld [vmem:[#allocation3 + $0x1518] sm:$0xff] }
 0x28a   :  { %v1129_v10 = vadd.f32 %v1128_v6, %v682_v3  ;;  %v1512_v12 = vadd.f32 %v1511_v8, %v683_v5  ;;  %v714_v3 = vld [vmem:[#allocation3 + $0x1520] sm:$0xff]  ;;  %v715_v5 = vld [vmem:[#allocation3 + $0x1528] sm:$0xff] }
 0x28c   :  { %v1130_v14 = vadd.f32 %v1129_v10, %v684_v7  ;;  %v1513_v16 = vadd.f32 %v1512_v12, %v685_v9  ;;  %v716_v7 = vld [vmem:[#allocation3 + $0x1530] sm:$0xff]  ;;  %v717_v9 = vld [vmem:[#allocation3 + $0x1538] sm:$0xff] }
 0x28e   :  { %v1131_v18 = vadd.f32 %v1130_v14, %v686_v11  ;;  %v1514_v20 = vadd.f32 %v1513_v16, %v687_v13  ;;  %v718_v11 = vld [vmem:[#allocation3 + $0x1540] sm:$0xff]  ;;  %v719_v13 = vld [vmem:[#allocation3 + $0x1548] sm:$0xff] }
 0x290   :  { %v1132_v22 = vadd.f32 %v1131_v18, %v688_v15  ;;  %v1515_v24 = vadd.f32 %v1514_v20, %v689_v17  ;;  %v720_v15 = vld [vmem:[#allocation3 + $0x1550] sm:$0xff]  ;;  %v721_v17 = vld [vmem:[#allocation3 + $0x1558] sm:$0xff] }
 0x292   :  { %v1133_v26 = vadd.f32 %v1132_v22, %v690_v19  ;;  %v1516_v28 = vadd.f32 %v1515_v24, %v691_v21  ;;  %v722_v19 = vld [vmem:[#allocation3 + $0x1560] sm:$0xff]  ;;  %v723_v21 = vld [vmem:[#allocation3 + $0x1568] sm:$0xff] }
 0x294   :  { %v1134_v30 = vadd.f32 %v1133_v26, %v692_v23  ;;  %v1517_v32 = vadd.f32 %v1516_v28, %v693_v25  ;;  %v724_v23 = vld [vmem:[#allocation3 + $0x1570] sm:$0xff]  ;;  %v725_v25 = vld [vmem:[#allocation3 + $0x1578] sm:$0xff] }
 0x296   :  { %v1135_v34 = vadd.f32 %v1134_v30, %v694_v27  ;;  %v1518_v36 = vadd.f32 %v1517_v32, %v695_v29  ;;  %v726_v27 = vld [vmem:[#allocation3 + $0x1580] sm:$0xff]  ;;  %v727_v29 = vld [vmem:[#allocation3 + $0x1588] sm:$0xff] }
 0x298   :  { %v1136_v38 = vadd.f32 %v1135_v34, %v696_v31  ;;  %v1519_v40 = vadd.f32 %v1518_v36, %v697_v33  ;;  %v728_v31 = vld [vmem:[#allocation3 + $0x1590] sm:$0xff]  ;;  %v729_v33 = vld [vmem:[#allocation3 + $0x1598] sm:$0xff] }
 0x29a   :  { %v1137_v42 = vadd.f32 %v1136_v38, %v698_v35  ;;  %v1520_v44 = vadd.f32 %v1519_v40, %v699_v37  ;;  %v730_v35 = vld [vmem:[#allocation3 + $0x15a0] sm:$0xff]  ;;  %v731_v37 = vld [vmem:[#allocation3 + $0x15a8] sm:$0xff] }
 0x29c   :  { %v1138_v46 = vadd.f32 %v1137_v42, %v700_v39  ;;  %v1521_v48 = vadd.f32 %v1520_v44, %v701_v41  ;;  %v732_v39 = vld [vmem:[#allocation3 + $0x15b0] sm:$0xff]  ;;  %v733_v41 = vld [vmem:[#allocation3 + $0x15b8] sm:$0xff] }
 0x29e   :  { %v1139_v50 = vadd.f32 %v1138_v46, %v702_v43  ;;  %v1522_v52 = vadd.f32 %v1521_v48, %v703_v45  ;;  %v734_v43 = vld [vmem:[#allocation3 + $0x15c0] sm:$0xff]  ;;  %v735_v45 = vld [vmem:[#allocation3 + $0x15c8] sm:$0xff] }
 0x2a0   :  { %v1140_v54 = vadd.f32 %v1139_v50, %v704_v47  ;;  %v1523_v56 = vadd.f32 %v1522_v52, %v705_v49  ;;  %v736_v47 = vld [vmem:[#allocation3 + $0x15d0] sm:$0xff]  ;;  %v737_v49 = vld [vmem:[#allocation3 + $0x15d8] sm:$0xff] }
 0x2a2   :  { %v1141_v58 = vadd.f32 %v1140_v54, %v706_v51  ;;  %v1524_v60 = vadd.f32 %v1523_v56, %v707_v53  ;;  %v738_v51 = vld [vmem:[#allocation3 + $0x15e0] sm:$0xff]  ;;  %v739_v53 = vld [vmem:[#allocation3 + $0x15e8] sm:$0xff] }
 0x2a4   :  { %v1142_v62 = vadd.f32 %v1141_v58, %v708_v55  ;;  %v1525_v0 = vadd.f32 %v1524_v60, %v709_v57  ;;  %v740_v55 = vld [vmem:[#allocation3 + $0x15f0] sm:$0xff]  ;;  %v741_v57 = vld [vmem:[#allocation3 + $0x15f8] sm:$0xff] }
 0x2a6   :  { %v1143_v2 = vadd.f32 %v1142_v62, %v710_v59  ;;  %v1526_v4 = vadd.f32 %v1525_v0, %v711_v61  ;;  %v742_v59 = vld [vmem:[#allocation3 + $0x1600] sm:$0xff]  ;;  %v743_v61 = vld [vmem:[#allocation3 + $0x1608] sm:$0xff] }
 0x2a8   :  { %v1144_v6 = vadd.f32 %v1143_v2, %v712_v63  ;;  %v1527_v8 = vadd.f32 %v1526_v4, %v713_v1  ;;  %v744_v63 = vld [vmem:[#allocation3 + $0x1610] sm:$0xff]  ;;  %v745_v1 = vld [vmem:[#allocation3 + $0x1618] sm:$0xff] }
 0x2aa   :  { %v1145_v10 = vadd.f32 %v1144_v6, %v714_v3  ;;  %v1528_v12 = vadd.f32 %v1527_v8, %v715_v5  ;;  %v746_v3 = vld [vmem:[#allocation3 + $0x1620] sm:$0xff]  ;;  %v747_v5 = vld [vmem:[#allocation3 + $0x1628] sm:$0xff] }
 0x2ac   :  { %v1146_v14 = vadd.f32 %v1145_v10, %v716_v7  ;;  %v1529_v16 = vadd.f32 %v1528_v12, %v717_v9  ;;  %v748_v7 = vld [vmem:[#allocation3 + $0x1630] sm:$0xff]  ;;  %v749_v9 = vld [vmem:[#allocation3 + $0x1638] sm:$0xff] }
 0x2ae   :  { %v1147_v18 = vadd.f32 %v1146_v14, %v718_v11  ;;  %v1530_v20 = vadd.f32 %v1529_v16, %v719_v13  ;;  %v750_v11 = vld [vmem:[#allocation3 + $0x1640] sm:$0xff]  ;;  %v751_v13 = vld [vmem:[#allocation3 + $0x1648] sm:$0xff] }
 0x2b0   :  { %v1148_v22 = vadd.f32 %v1147_v18, %v720_v15  ;;  %v1531_v24 = vadd.f32 %v1530_v20, %v721_v17  ;;  %v752_v15 = vld [vmem:[#allocation3 + $0x1650] sm:$0xff]  ;;  %v753_v17 = vld [vmem:[#allocation3 + $0x1658] sm:$0xff] }
 0x2b2   :  { %v1149_v26 = vadd.f32 %v1148_v22, %v722_v19  ;;  %v1532_v28 = vadd.f32 %v1531_v24, %v723_v21  ;;  %v754_v19 = vld [vmem:[#allocation3 + $0x1660] sm:$0xff]  ;;  %v755_v21 = vld [vmem:[#allocation3 + $0x1668] sm:$0xff] }
 0x2b4   :  { %v1150_v30 = vadd.f32 %v1149_v26, %v724_v23  ;;  %v1533_v32 = vadd.f32 %v1532_v28, %v725_v25  ;;  %v756_v23 = vld [vmem:[#allocation3 + $0x1670] sm:$0xff]  ;;  %v757_v25 = vld [vmem:[#allocation3 + $0x1678] sm:$0xff] }
 0x2b6   :  { %v1151_v34 = vadd.f32 %v1150_v30, %v726_v27  ;;  %v1534_v36 = vadd.f32 %v1533_v32, %v727_v29  ;;  %v758_v27 = vld [vmem:[#allocation3 + $0x1680] sm:$0xff]  ;;  %v759_v29 = vld [vmem:[#allocation3 + $0x1688] sm:$0xff] }
 0x2b8   :  { %v1152_v38 = vadd.f32 %v1151_v34, %v728_v31  ;;  %v1535_v40 = vadd.f32 %v1534_v36, %v729_v33  ;;  %v760_v31 = vld [vmem:[#allocation3 + $0x1690] sm:$0xff]  ;;  %v761_v33 = vld [vmem:[#allocation3 + $0x1698] sm:$0xff] }
 0x2ba   :  { %v1153_v42 = vadd.f32 %v1152_v38, %v730_v35  ;;  %v1536_v44 = vadd.f32 %v1535_v40, %v731_v37  ;;  %v762_v35 = vld [vmem:[#allocation3 + $0x16a0] sm:$0xff]  ;;  %v763_v37 = vld [vmem:[#allocation3 + $0x16a8] sm:$0xff] }
 0x2bc   :  { %v1154_v46 = vadd.f32 %v1153_v42, %v732_v39  ;;  %v1537_v48 = vadd.f32 %v1536_v44, %v733_v41  ;;  %v764_v39 = vld [vmem:[#allocation3 + $0x16b0] sm:$0xff]  ;;  %v765_v41 = vld [vmem:[#allocation3 + $0x16b8] sm:$0xff] }
 0x2be   :  { %v1155_v50 = vadd.f32 %v1154_v46, %v734_v43  ;;  %v1538_v52 = vadd.f32 %v1537_v48, %v735_v45  ;;  %v766_v43 = vld [vmem:[#allocation3 + $0x16c0] sm:$0xff]  ;;  %v767_v45 = vld [vmem:[#allocation3 + $0x16c8] sm:$0xff] }
 0x2c0   :  { %v1156_v54 = vadd.f32 %v1155_v50, %v736_v47  ;;  %v1539_v56 = vadd.f32 %v1538_v52, %v737_v49  ;;  %v768_v47 = vld [vmem:[#allocation3 + $0x16d0] sm:$0xff]  ;;  %v769_v49 = vld [vmem:[#allocation3 + $0x16d8] sm:$0xff] }
 0x2c2   :  { %v1157_v58 = vadd.f32 %v1156_v54, %v738_v51  ;;  %v1540_v60 = vadd.f32 %v1539_v56, %v739_v53  ;;  %v770_v51 = vld [vmem:[#allocation3 + $0x16e0] sm:$0xff]  ;;  %v771_v53 = vld [vmem:[#allocation3 + $0x16e8] sm:$0xff] }
 0x2c4   :  { %v1158_v62 = vadd.f32 %v1157_v58, %v740_v55  ;;  %v1541_v0 = vadd.f32 %v1540_v60, %v741_v57  ;;  %v772_v55 = vld [vmem:[#allocation3 + $0x16f0] sm:$0xff]  ;;  %v773_v57 = vld [vmem:[#allocation3 + $0x16f8] sm:$0xff] }
 0x2c6   :  { %v1159_v2 = vadd.f32 %v1158_v62, %v742_v59  ;;  %v1542_v4 = vadd.f32 %v1541_v0, %v743_v61  ;;  %v774_v59 = vld [vmem:[#allocation3 + $0x1700] sm:$0xff]  ;;  %v775_v61 = vld [vmem:[#allocation3 + $0x1708] sm:$0xff] }
 0x2c8   :  { %v1160_v6 = vadd.f32 %v1159_v2, %v744_v63  ;;  %v1543_v8 = vadd.f32 %v1542_v4, %v745_v1  ;;  %v776_v63 = vld [vmem:[#allocation3 + $0x1710] sm:$0xff]  ;;  %v777_v1 = vld [vmem:[#allocation3 + $0x1718] sm:$0xff] }
 0x2ca   :  { %v1161_v10 = vadd.f32 %v1160_v6, %v746_v3  ;;  %v1544_v12 = vadd.f32 %v1543_v8, %v747_v5  ;;  %v778_v3 = vld [vmem:[#allocation3 + $0x1720] sm:$0xff]  ;;  %v779_v5 = vld [vmem:[#allocation3 + $0x1728] sm:$0xff] }
 0x2cc   :  { %v1162_v14 = vadd.f32 %v1161_v10, %v748_v7  ;;  %v1545_v16 = vadd.f32 %v1544_v12, %v749_v9  ;;  %v780_v7 = vld [vmem:[#allocation3 + $0x1730] sm:$0xff]  ;;  %v781_v9 = vld [vmem:[#allocation3 + $0x1738] sm:$0xff] }
 0x2ce   :  { %v1163_v18 = vadd.f32 %v1162_v14, %v750_v11  ;;  %v1546_v20 = vadd.f32 %v1545_v16, %v751_v13  ;;  %v782_v11 = vld [vmem:[#allocation3 + $0x1740] sm:$0xff]  ;;  %v783_v13 = vld [vmem:[#allocation3 + $0x1748] sm:$0xff] }
 0x2d0   :  { %v1164_v22 = vadd.f32 %v1163_v18, %v752_v15  ;;  %v1547_v24 = vadd.f32 %v1546_v20, %v753_v17  ;;  %v784_v15 = vld [vmem:[#allocation3 + $0x1750] sm:$0xff]  ;;  %v785_v17 = vld [vmem:[#allocation3 + $0x1758] sm:$0xff] }
 0x2d2   :  { %v1165_v26 = vadd.f32 %v1164_v22, %v754_v19  ;;  %v1548_v28 = vadd.f32 %v1547_v24, %v755_v21  ;;  %v786_v19 = vld [vmem:[#allocation3 + $0x1760] sm:$0xff]  ;;  %v787_v21 = vld [vmem:[#allocation3 + $0x1768] sm:$0xff] }
 0x2d4   :  { %v1166_v30 = vadd.f32 %v1165_v26, %v756_v23  ;;  %v1549_v32 = vadd.f32 %v1548_v28, %v757_v25  ;;  %v788_v23 = vld [vmem:[#allocation3 + $0x1770] sm:$0xff]  ;;  %v789_v25 = vld [vmem:[#allocation3 + $0x1778] sm:$0xff] }
 0x2d6   :  { %v1167_v34 = vadd.f32 %v1166_v30, %v758_v27  ;;  %v1550_v36 = vadd.f32 %v1549_v32, %v759_v29  ;;  %v790_v27 = vld [vmem:[#allocation3 + $0x1780] sm:$0xff]  ;;  %v791_v29 = vld [vmem:[#allocation3 + $0x1788] sm:$0xff] }
 0x2d8   :  { %v1168_v38 = vadd.f32 %v1167_v34, %v760_v31  ;;  %v1551_v40 = vadd.f32 %v1550_v36, %v761_v33  ;;  %v792_v31 = vld [vmem:[#allocation3 + $0x1790] sm:$0xff]  ;;  %v793_v33 = vld [vmem:[#allocation3 + $0x1798] sm:$0xff] }
 0x2da   :  { %v1169_v42 = vadd.f32 %v1168_v38, %v762_v35  ;;  %v1552_v44 = vadd.f32 %v1551_v40, %v763_v37  ;;  %v794_v35 = vld [vmem:[#allocation3 + $0x17a0] sm:$0xff]  ;;  %v795_v37 = vld [vmem:[#allocation3 + $0x17a8] sm:$0xff] }
 0x2dc   :  { %v1170_v46 = vadd.f32 %v1169_v42, %v764_v39  ;;  %v1553_v48 = vadd.f32 %v1552_v44, %v765_v41  ;;  %v796_v39 = vld [vmem:[#allocation3 + $0x17b0] sm:$0xff]  ;;  %v797_v41 = vld [vmem:[#allocation3 + $0x17b8] sm:$0xff] }
 0x2de   :  { %v1171_v50 = vadd.f32 %v1170_v46, %v766_v43  ;;  %v1554_v52 = vadd.f32 %v1553_v48, %v767_v45  ;;  %v798_v43 = vld [vmem:[#allocation3 + $0x17c0] sm:$0xff]  ;;  %v799_v45 = vld [vmem:[#allocation3 + $0x17c8] sm:$0xff] }
 0x2e0   :  { %v1172_v54 = vadd.f32 %v1171_v50, %v768_v47  ;;  %v1555_v56 = vadd.f32 %v1554_v52, %v769_v49  ;;  %v800_v47 = vld [vmem:[#allocation3 + $0x17d0] sm:$0xff]  ;;  %v801_v49 = vld [vmem:[#allocation3 + $0x17d8] sm:$0xff] }
 0x2e2   :  { %v1173_v58 = vadd.f32 %v1172_v54, %v770_v51  ;;  %v1556_v60 = vadd.f32 %v1555_v56, %v771_v53  ;;  %v802_v51 = vld [vmem:[#allocation3 + $0x17e0] sm:$0xff]  ;;  %v803_v53 = vld [vmem:[#allocation3 + $0x17e8] sm:$0xff] }
 0x2e4   :  { %v1174_v62 = vadd.f32 %v1173_v58, %v772_v55  ;;  %v1557_v0 = vadd.f32 %v1556_v60, %v773_v57  ;;  %v804_v55 = vld [vmem:[#allocation3 + $0x17f0] sm:$0xff]  ;;  %v805_v57 = vld [vmem:[#allocation3 + $0x17f8] sm:$0xff] }
 0x2e6   :  { %v1175_v2 = vadd.f32 %v1174_v62, %v774_v59  ;;  %v1558_v4 = vadd.f32 %v1557_v0, %v775_v61 }
 0x2e8   :  { %v1176_v6 = vadd.f32 %v1175_v2, %v776_v63  ;;  %v1559_v8 = vadd.f32 %v1558_v4, %v777_v1 }
 0x2ea   :  { %v1177_v10 = vadd.f32 %v1176_v6, %v778_v3  ;;  %v1560_v12 = vadd.f32 %v1559_v8, %v779_v5  ;;  %v1601_v8 = vlaneseq }
 0x2ec   :  { %v1178_v14 = vadd.f32 %v1177_v10, %v780_v7  ;;  %v1561_v16 = vadd.f32 %v1560_v12, %v781_v9  ;;  %vm1603_vm1 = vcmp.lt.s32.totalorder %v1601_v8, 256 }
 0x2ee   :  { %v1179_v18 = vadd.f32 %v1178_v14, %v782_v11  ;;  %v1562_v20 = vadd.f32 %v1561_v16, %v783_v13 }
 0x2f0   :  { %v1180_v22 = vadd.f32 %v1179_v18, %v784_v15  ;;  %v1563_v24 = vadd.f32 %v1562_v20, %v785_v17 }
 0x2f2   :  { %v1181_v26 = vadd.f32 %v1180_v22, %v786_v19  ;;  %v1564_v28 = vadd.f32 %v1563_v24, %v787_v21 }
 0x2f4   :  { %v1182_v30 = vadd.f32 %v1181_v26, %v788_v23  ;;  %v1565_v32 = vadd.f32 %v1564_v28, %v789_v25 }
 0x2f6   :  { %v1183_v34 = vadd.f32 %v1182_v30, %v790_v27  ;;  %v1566_v36 = vadd.f32 %v1565_v32, %v791_v29 }
 0x2f8   :  { %v1184_v38 = vadd.f32 %v1183_v34, %v792_v31  ;;  %v1567_v40 = vadd.f32 %v1566_v36, %v793_v33 }
 0x2fa   :  { %v1185_v42 = vadd.f32 %v1184_v38, %v794_v35  ;;  %v1568_v44 = vadd.f32 %v1567_v40, %v795_v37 }
 0x2fc   :  { %v1186_v46 = vadd.f32 %v1185_v42, %v796_v39  ;;  %v1569_v48 = vadd.f32 %v1568_v44, %v797_v41 }
 0x2fe   :  { %v1187_v50 = vadd.f32 %v1186_v46, %v798_v43  ;;  %v1570_v52 = vadd.f32 %v1569_v48, %v799_v45 }
 0x300   :  { %v1188_v54 = vadd.f32 %v1187_v50, %v800_v47  ;;  %v1571_v56 = vadd.f32 %v1570_v52, %v801_v49 }
 0x302   :  { %v1189_v58 = vadd.f32 %v1188_v54, %v802_v51  ;;  %v1572_v59 = vadd.f32 %v1571_v56, %v803_v53 }
 0x304   :  { %v1190_v60 = vadd.f32 %v1189_v58, %v804_v55  ;;  %v1573_v61 = vadd.f32 %v1572_v59, %v805_v57 }
 0x306   :  { %v1583_v62 = vrot.slane %v1190_v60, 4  ;;  %v1589_v63 = vrot.slane %v1573_v61, 4 }
 0x308   :  { %v1584_v0 = vadd.f32 %v1583_v62, %v1190_v60  ;;  %v1590_v1 = vadd.f32 %v1589_v63, %v1573_v61 }
 0x30a   :  { %v1585_v2 = vrot.slane %v1584_v0, 2  ;;  %v1591_v3 = vrot.slane %v1590_v1, 2 }
 0x30c   :  { %v1586_v4 = vadd.f32 %v1585_v2, %v1584_v0  ;;  %v1592_v5 = vadd.f32 %v1591_v3, %v1590_v1 }
 0x30e   :  { %v1587_v6 = vrot.slane %v1586_v4, 1  ;;  %v1593_v7 = vrot.slane %v1592_v5, 1 }
 0x310   :  { %v1588_v9 = vadd.f32 %v1587_v6, %v1586_v4  ;;  %v1594_v10 = vadd.f32 %v1593_v7, %v1592_v5 }
 0x312   :  { %v1597_v11 = vrot.slane %v1594_v10, 7 }
 0x314   :  { %v1599_v12 = vsel %vm1598_vm0, %v1588_v9, %v1597_v11 }
 0x315   :  { %1605 = vst.msk [vmem:[#allocation6] sm:$0x3] %vm1603_vm1, %v1599_v12 }
 0x316   :  { %1616 = dma.vmem_to_hbm [thread:$0]  %s1612_s13, 32, %s1614_s16, [#allocation5]  }
 0x317   :  { %1677 = dma.done.wait [#allocation5], 32  }
 0x318   :  { %1678 = vsyncadd [#allocation5], 4294967264 }
 0x319   :  { %1621 = vsyncpa [#allocation4], 1 }
 0x31a   :  { %1622 = vsyncpa [#allocation5], 1 }

</bundles_post_ra>
